<compile_context>
chip_gen: v6e
topology: v6e:2x2x1
jax: 0.10.0
libtpu: 0.0.40
codegen_flags: <defaults>
</compile_context>

<pallas_src>
import jax
import jax.numpy as jnp
import numpy as np
from jax.experimental import pallas as pl
from jax.experimental.pallas import tpu as pltpu


def _round_up(v, m):
    return (v + m - 1) // m * m


def _pick_tile(candidates, n):
    for c in candidates:
        if c <= n and n % c == 0:
            return c
    return n


def _pad_tile_bytes(r, c, itemsize):
    return _round_up(max(r, 1), 8) * _round_up(max(c, 1), 128) * itemsize


# ----------------------------------------------------------------------------
# GDC glue (preprocessing transform) - plain JAX.
# ----------------------------------------------------------------------------
def gdc_dense_mask(edge_index, num_nodes, alpha=0.15, self_loop_weight=1.0,
                   avg_degree=64):
    N = num_nodes
    adj = jnp.zeros((N, N), jnp.float32).at[edge_index[0], edge_index[1]].add(1.0)
    adj = adj + self_loop_weight * jnp.eye(N, dtype=jnp.float32)
    deg = jnp.sum(adj, axis=0)
    dinv = jax.lax.rsqrt(deg)
    T = dinv[:, None] * adj * dinv[None, :]
    # exact PPR: S = alpha * (I + (alpha-1) T)^-1
    S = alpha * jnp.linalg.inv(jnp.eye(N, dtype=jnp.float32) + (alpha - 1.0) * T)
    k = avg_degree * N
    if k >= N * N:
        mask = jnp.ones((N, N), jnp.float32)
    else:
        vals = jnp.sort(S.reshape(-1))[::-1]
        eps = 0.5 * (vals[k - 1] + vals[k])
        mask = (S >= eps).astype(jnp.float32)
    return mask


# ----------------------------------------------------------------------------
# Kernel 1: rank-1 GAT (streaming softmax over K tiles) + ELU + GCN feature
# transform + source-side D^-1/2 scale.
# Output: x2_scaled[s, :] = rsqrt(deg[s]) * (ELU(gat(x))[s] @ W_gcn)  (bf16)
# ----------------------------------------------------------------------------
def gat_feat_kernel(a_ref, xd_ref, xrow_ref, c_ref, w_gat_ref, b_gat_ref,
                    w_gcn_ref, x2s_ref, m_sc, l_sc, num_sc):
    k = pl.program_id(1)

    @pl.when(k == 0)
    def _init():
        m_sc[...] = jnp.full_like(m_sc, -1e30)
        l_sc[...] = jnp.zeros_like(l_sc)
        num_sc[...] = jnp.zeros_like(num_sc)

    A = a_ref[...]                     # [TM, TK] bf16, exact 0/1
    x_col = xd_ref[:, 0:1]             # [TM, 1]  target features
    x_row = xrow_ref[...]              # [1, TK]  source features
    c_src = c_ref[0]                   # SMEM scalars (att . w), hoisted to glue
    c_dst = c_ref[1]

    # e[t, s] = LeakyReLU(c_dst * x_t + c_src * x_s), masked on non-edges.
    e = c_dst * x_col + c_src * x_row
    e = jnp.where(e > 0, e, 0.2 * e)                       # LeakyReLU(0.2)
    e = jnp.where(A > 0, e, -1e30)

    # streaming softmax carried across K tiles (non-edges underflow to 0).
    m_prev = m_sc[...]
    m_new = jnp.maximum(m_prev, jnp.max(e, axis=1, keepdims=True))
    alpha = jnp.exp(m_prev - m_new)
    p = jnp.exp(e - m_new)
    l_sc[...] = alpha * l_sc[...] + jnp.sum(p, axis=1, keepdims=True)
    num_sc[...] = alpha * num_sc[...] + jnp.sum(p * x_row, axis=1, keepdims=True)
    m_sc[...] = m_new

    @pl.when(k == pl.num_programs(1) - 1)
    def _finalize():
        agg = num_sc[...] * pl.reciprocal(l_sc[...], approx=True)   # att @ x
        h1 = agg * w_gat_ref[...] + b_gat_ref[...]                  # [TM, 16]
        h1 = jnp.where(h1 > 0, h1, jnp.exp(h1) - 1.0)               # ELU
        dinv = xd_ref[:, 1:2]
        x2s_ref[...] = (dinv * jnp.dot(h1, w_gcn_ref[...],
                                       preferred_element_type=jnp.float32)
                        ).astype(x2s_ref.dtype)


# ----------------------------------------------------------------------------
# Kernel 2: GCN propagation  h2 = ELU( D^-1/2 A (D^-1/2 X W) + b ),
# K-tiled accumulation in f32 scratch; bf16 MXU operands.
# ----------------------------------------------------------------------------
def gcn_prop_kernel(a_ref, xd_ref, x2s_ref, b_gcn_ref, h2_ref, acc_sc):
    k = pl.program_id(1)

    @pl.when(k == 0)
    def _init():
        acc_sc[...] = jnp.zeros_like(acc_sc)

    acc_sc[...] += jnp.dot(a_ref[...], x2s_ref[...],
                           preferred_element_type=jnp.float32)       # [TM, 32]

    @pl.when(k == pl.num_programs(1) - 1)
    def _finalize():
        h2 = xd_ref[:, 1:2] * acc_sc[...] + b_gcn_ref[...]
        h2_ref[...] = jnp.where(h2 > 0, h2, jnp.exp(h2) - 1.0)       # ELU


# ----------------------------------------------------------------------------
# Kernel 3 (tiny, gridless): global max / mean / add pool + Linear(96, 2).
# ----------------------------------------------------------------------------
def pool_lin_kernel(h2_ref, b_ref, bt_ref, cnt_ref, w_lin_ref, b_lin_ref, out_ref):
    h2 = h2_ref[...]                 # [Np, 32]
    B = b_ref[...]                   # [Gp, Np] one-hot (padded graphs all-zero)
    BT = bt_ref[...]                 # [Np, Gp]
    cnt = cnt_ref[...]               # [Gp, 1] raw node counts (0 for padded graphs)
    valid = cnt > 0

    addp = jnp.dot(B, h2, preferred_element_type=jnp.float32)        # [Gp, 32]
    meanp = addp / jnp.maximum(cnt, 1.0)

    rows = []
    for g in range(b_ref.shape[0]):  # G_pad == 8, tiny static unroll
        masked = jnp.where(BT[:, g:g + 1] > 0, h2, -1e30)
        rows.append(jnp.max(masked, axis=0, keepdims=True))          # [1, 32]
    maxp = jnp.where(valid, jnp.concatenate(rows, axis=0), 0.0)      # [Gp, 32]

    feat = jnp.concatenate([maxp, meanp, addp], axis=1)              # [Gp, 96]
    out_ref[...] = (jnp.dot(feat, w_lin_ref[...],
                            preferred_element_type=jnp.float32) + b_lin_ref[...])


# ----------------------------------------------------------------------------
# Forward wrapper.
# ----------------------------------------------------------------------------
def gnn_v2_forward(x, edge_index, batch, num_graphs, params):
    N = int(x.shape[0])
    G = int(num_graphs)
    (w_gat, a_src, a_dst, b_gat, w_gcn, b_gcn, w_lin, b_lin) = params

    # --- GDC transform (topology only; weights unused downstream) -----------
    mask = gdc_dense_mask(edge_index, N)                             # mask[s, t]
    A = jnp.where(jnp.eye(N, dtype=bool), 1.0, mask.T).astype(jnp.float32)  # A[t, s]

    # --- padding / tiling ----------------------------------------------------
    # lane axis only needs 128 alignment; rows share the same pad so kernel 2's
    # K axis lines up with kernel 1's row output.
    N_pad = _round_up(N, 128)
    TM = _pick_tile((512, 256, 128), N_pad)
    if N_pad // TM < 2 and TM > 128:
        TM //= 2                       # >=2 row tiles so v7x's 2 TCs both work
    TK = _pick_tile((2048, 1024, 512, 256, 128), N_pad)
    n_row = N_pad // TM
    n_col = N_pad // TK
    G_pad = max(8, _round_up(G, 8))

    # A in bf16 (values exactly 0/1): halves HBM traffic of kernels 1 & 2.
    A_pad = jnp.zeros((N_pad, N_pad), jnp.bfloat16).at[:N, :N].set(
        A.astype(jnp.bfloat16))
    if N_pad > N:
        pad_idx = jnp.arange(N, N_pad)
        # padded rows get a self loop so every softmax row is non-empty;
        # padded columns stay 0 so real targets never attend to pad nodes.
        A_pad = A_pad.at[pad_idx, pad_idx].set(1.0)

    # rsqrt(in-degree) hoisted to glue; same vector on both sides (gcn_norm).
    deg = jnp.sum(A, axis=1)                                         # [N]
    dinv = jax.lax.rsqrt(deg)
    x_pad = jnp.zeros((N_pad,), jnp.float32).at[:N].set(x[:, 0].astype(jnp.float32))
    dinv_pad = jnp.ones((N_pad,), jnp.float32).at[:N].set(dinv)
    xd = jnp.stack([x_pad, dinv_pad], axis=1)                        # [Np, 2]
    x_row = x_pad[None, :]                                           # [1, Np]

    # Hoisted scalar attention coefficients (in_features == 1 => rank-1 GAT).
    c = jnp.stack([jnp.sum(a_src * w_gat),
                   jnp.sum(a_dst * w_gat)]).astype(jnp.float32)      # (2,), SMEM

    # Pool assignment (graphs padded up to 8 rows).
    B = jnp.zeros((G_pad, N_pad), jnp.float32)
    B = B.at[:, :N].set(jax.nn.one_hot(batch, G_pad, dtype=jnp.float32).T)
    BT = B.T
    cnt = jnp.sum(B, axis=1, keepdims=True)                          # raw counts

    # --- VMEM budget derived from actual tile sizes (generation-aware cap) ---
    vmem_need = max(
        # kernel 1: A strip + x_row + xd + x2s out (all double buffered) + carries
        2 * _pad_tile_bytes(TM, TK, 2) + 2 * _pad_tile_bytes(1, TK, 4)
        + 2 * _pad_tile_bytes(TM, 2, 4) + 2 * _pad_tile_bytes(TM, 32, 2)
        + 3 * _pad_tile_bytes(TM, 1, 4) + 8 * _pad_tile_bytes(16, 32, 4),
        # kernel 2: A strip + x2s K tile + xd + h2 out + accumulator
        2 * _pad_tile_bytes(TM, TK, 2) + 2 * _pad_tile_bytes(TK, 32, 2)
        + 2 * _pad_tile_bytes(TM, 2, 4) + 2 * _pad_tile_bytes(TM, 32, 4)
        + _pad_tile_bytes(TM, 32, 4) + 2 * _pad_tile_bytes(1, 32, 4),
    )
    vmem_limit = min(max(vmem_need + (8 << 20), 16 << 20), 48 << 20)
    try:
        vmem_limit = min(vmem_limit,
                         int(0.75 * pltpu.get_tpu_info().vmem_capacity_bytes))
    except Exception:
        pass

    cparams = pltpu.CompilerParams(
        dimension_semantics=("parallel", "arbitrary"),
        vmem_limit_bytes=int(vmem_limit))

    # --- kernel 1: GAT (streaming softmax) + ELU + GCN feature transform -----
    x2s = pl.pallas_call(
        gat_feat_kernel,
        out_shape=jax.ShapeDtypeStruct((N_pad, 32), jnp.bfloat16),
        grid=(n_row, n_col),
        in_specs=[
            pl.BlockSpec((TM, TK), lambda i, k: (i, k)),        # A block (bf16)
            pl.BlockSpec((TM, 2), lambda i, k: (i, 0)),         # [x | rsqrt(deg)]
            pl.BlockSpec((1, TK), lambda i, k: (0, k)),         # x_row K tile
            pl.BlockSpec(memory_space=pltpu.MemorySpace.SMEM),  # (c_src, c_dst)
            pl.BlockSpec((1, 16), lambda i, k: (0, 0)),         # w_gat
            pl.BlockSpec((1, 16), lambda i, k: (0, 0)),         # b_gat
            pl.BlockSpec((16, 32), lambda i, k: (0, 0)),        # w_gcn
        ],
        out_specs=pl.BlockSpec((TM, 32), lambda i, k: (i, 0)),
        scratch_shapes=[pltpu.VMEM((TM, 1), jnp.float32)] * 3,  # m, l, num
        compiler_params=cparams,
        cost_estimate=pl.CostEstimate(
            flops=int(10 * N_pad * N_pad + 2 * N_pad * 16 * 32),
            transcendentals=int(N_pad * N_pad + 48 * N_pad),
            bytes_accessed=int(2 * N_pad * N_pad + 200 * N_pad)),
    )(A_pad, xd, x_row, c, w_gat, b_gat, w_gcn)

    # --- kernel 2: GCN propagation (K-tiled accumulate) + ELU -----------------
    h2 = pl.pallas_call(
        gcn_prop_kernel,
        out_shape=jax.ShapeDtypeStruct((N_pad, 32), jnp.float32),
        grid=(n_row, n_col),
        in_specs=[
            pl.BlockSpec((TM, TK), lambda i, k: (i, k)),        # A block (bf16)
            pl.BlockSpec((TM, 2), lambda i, k: (i, 0)),         # rsqrt(deg) col 1
            pl.BlockSpec((TK, 32), lambda i, k: (k, 0)),        # x2_scaled K tile
            pl.BlockSpec((1, 32), lambda i, k: (0, 0)),         # b_gcn
        ],
        out_specs=pl.BlockSpec((TM, 32), lambda i, k: (i, 0)),
        scratch_shapes=[pltpu.VMEM((TM, 32), jnp.float32)],
        compiler_params=cparams,
        cost_estimate=pl.CostEstimate(
            flops=int(2 * N_pad * N_pad * 32),
            transcendentals=int(32 * N_pad),
            bytes_accessed=int(2 * N_pad * N_pad + 2 * n_row * N_pad * 32
                               + 4 * N_pad * 32)),
    )(A_pad, xd, x2s, b_gcn)

    # --- kernel 3: pooling + final linear ------------------------------------
    out_pad = pl.pallas_call(
        pool_lin_kernel,
        out_shape=jax.ShapeDtypeStruct((G_pad, 2), jnp.float32),
        in_specs=[pl.BlockSpec(memory_space=pltpu.MemorySpace.VMEM)] * 6,
        out_specs=pl.BlockSpec(memory_space=pltpu.MemorySpace.VMEM),
    )(h2, B, BT, cnt, w_lin, b_lin)

    return out_pad[:G, :]


# ----------------------------------------------------------------------------
# Pure-JAX reference (same math, unpadded, all f32) for a sanity check.
# ----------------------------------------------------------------------------
def gnn_v2_reference(x, edge_index, batch, num_graphs, params):
    (w_gat, a_src, a_dst, b_gat, w_gcn, b_gcn, w_lin, b_lin) = params
    N = x.shape[0]
    G = num_graphs
    mask = gdc_dense_mask(edge_index, N)
    A = jnp.where(jnp.eye(N, dtype=bool), 1.0, mask.T).astype(jnp.float32)

    x_lin = x * w_gat
    c_src = jnp.sum(a_src * w_gat)
    c_dst = jnp.sum(a_dst * w_gat)
    e = c_dst * x + c_src * x.T
    e = jnp.where(e > 0, e, 0.2 * e)
    e = jnp.where(A > 0, e, -1e30)
    e = e - jnp.max(e, axis=1, keepdims=True)
    p = jnp.where(A > 0, jnp.exp(e), 0.0)
    att = p / jnp.sum(p, axis=1, keepdims=True)
    h1 = att @ x_lin + b_gat
    h1 = jnp.where(h1 > 0, h1, jnp.exp(h1) - 1.0)

    deg = jnp.sum(A, axis=1)
    dinv = jax.lax.rsqrt(deg)
    norm = dinv[:, None] * A * dinv[None, :]
    h2 = norm @ (h1 @ w_gcn) + b_gcn
    h2 = jnp.where(h2 > 0, h2, jnp.exp(h2) - 1.0)

    B = jax.nn.one_hot(batch, G, dtype=jnp.float32).T
    addp = B @ h2
    meanp = addp / jnp.sum(B, axis=1, keepdims=True)
    maxp = jnp.stack([jnp.max(jnp.where(B[g][:, None] > 0, h2, -1e30), axis=0)
                      for g in range(G)], axis=0)
    feat = jnp.concatenate([maxp, meanp, addp], axis=1)
    return feat @ w_lin + b_lin


if __name__ == "__main__":
    # Small synthetic batched graph: 2 graphs x 6 nodes, ring topology.
    N, G = 12, 2
    src, dst = [], []
    for g in range(G):
        off = 6 * g
        for i in range(6):
            a, b = off + i, off + (i + 1) % 6
            src += [a, b]
            dst += [b, a]
    edge_index = jnp.array([src, dst], dtype=jnp.int32)          # [2, 24]
    batch = jnp.array([0] * 6 + [1] * 6, dtype=jnp.int32)        # [12]

    key = jax.random.PRNGKey(0)
    keys = jax.random.split(key, 9)
    params = (
        0.3 * jax.random.normal(keys[0], (1, 16), jnp.float32),   # GAT lin weight (W^T)
        0.3 * jax.random.normal(keys[1], (1, 16), jnp.float32),   # att_src
        0.3 * jax.random.normal(keys[2], (1, 16), jnp.float32),   # att_dst
        0.1 * jax.random.normal(keys[3], (1, 16), jnp.float32),   # GAT bias
        0.3 * jax.random.normal(keys[4], (16, 32), jnp.float32),  # GCN weight (in x out)
        0.1 * jax.random.normal(keys[5], (1, 32), jnp.float32),   # GCN bias
        0.3 * jax.random.normal(keys[6], (96, 2), jnp.float32),   # Linear weight (in x out)
        0.1 * jax.random.normal(keys[7], (1, 2), jnp.float32),    # Linear bias
    )
    x = jax.random.normal(keys[8], (N, 1), jnp.float32)

    out = gnn_v2_forward(x, edge_index, batch, G, params)
    out = jax.block_until_ready(out)

    ref = jax.block_until_ready(gnn_v2_reference(x, edge_index, batch, G, params))
    assert out.shape == (G, 2), out.shape
    assert np.all(np.isfinite(np.asarray(out)))
    # bf16 A/x2s on the MXU + approx reciprocal -> slightly looser tolerance.
    np.testing.assert_allclose(np.asarray(out), np.asarray(ref), rtol=2e-2, atol=2e-2)

    print("KERNEL_OK")
</pallas_src>

<mosaic_0001>
module attributes {stable_mosaic.version = 11 : i64} {
  func.func @gat_feat_kernel(%arg0: i32, %arg1: i32, %arg2: memref<128x128xbf16, #tpu.memory_space<vmem>>, %arg3: memref<128x2xf32, #tpu.memory_space<vmem>>, %arg4: memref<1x128xf32, #tpu.memory_space<vmem>>, %arg5: memref<2xf32, #tpu.memory_space<smem>>, %arg6: memref<1x16xf32, #tpu.memory_space<vmem>>, %arg7: memref<1x16xf32, #tpu.memory_space<vmem>>, %arg8: memref<16x32xf32, #tpu.memory_space<vmem>>, %arg9: memref<128x32xbf16, #tpu.memory_space<vmem>>, %arg10: memref<128x1xf32, #tpu.memory_space<vmem>>, %arg11: memref<128x1xf32, #tpu.memory_space<vmem>>, %arg12: memref<128x1xf32, #tpu.memory_space<vmem>>) attributes {dimension_semantics = [#tpu.dimension_semantics<parallel>, #tpu.dimension_semantics<arbitrary>], iteration_bounds = array<i64: 1, 1>, scalar_prefetch = 0 : i64, scratch_operands = 3 : i64, tpu.core_type = #tpu.core_type<tc>, window_params = [{transform_indices = @transform_0, window_bounds = array<i64: 128, 128>}, {transform_indices = @transform_1, window_bounds = array<i64: 128, 2>}, {transform_indices = @transform_2, window_bounds = array<i64: 1, 128>}, {transform_indices = @transform_3, window_bounds = array<i64: 2>}, {pipeline_mode = #tpu.pipeline_mode<synchronous>, transform_indices = @transform_4, window_bounds = array<i64: 1, 16>}, {pipeline_mode = #tpu.pipeline_mode<synchronous>, transform_indices = @transform_5, window_bounds = array<i64: 1, 16>}, {pipeline_mode = #tpu.pipeline_mode<synchronous>, transform_indices = @transform_6, window_bounds = array<i64: 16, 32>}, {transform_indices = @transform_7, window_bounds = array<i64: 128, 32>}]} {
    %c0_i32 = arith.constant 0 : i32
    %0 = arith.cmpi eq, %arg1, %c0_i32 : i32
    %1 = arith.extui %0 : i1 to i32
    %c0_i32_0 = arith.constant 0 : i32
    %2 = arith.cmpi ne, %1, %c0_i32_0 : i32
    scf.if %2 {
      %cst_27 = arith.constant -1.000000e+30 : f32
      %51 = vector.broadcast %cst_27 : f32 to vector<128x1xf32>
      %c0_28 = arith.constant 0 : index
      %c0_29 = arith.constant 0 : index
      %52 = vector.load %arg10[%c0_28, %c0_29] : memref<128x1xf32, #tpu.memory_space<vmem>>, vector<128x1xf32>
      tpu.vector_store %arg10[%c0_28, %c0_29], %51 {strides = array<i32>} : memref<128x1xf32, #tpu.memory_space<vmem>>, vector<128x1xf32>,
      %cst_30 = arith.constant 0.000000e+00 : f32
      %53 = vector.broadcast %cst_30 : f32 to vector<128x1xf32>
      %c0_31 = arith.constant 0 : index
      %c0_32 = arith.constant 0 : index
      %54 = vector.load %arg11[%c0_31, %c0_32] : memref<128x1xf32, #tpu.memory_space<vmem>>, vector<128x1xf32>
      tpu.vector_store %arg11[%c0_31, %c0_32], %53 {strides = array<i32>} : memref<128x1xf32, #tpu.memory_space<vmem>>, vector<128x1xf32>,
      %cst_33 = arith.constant 0.000000e+00 : f32
      %55 = vector.broadcast %cst_33 : f32 to vector<128x1xf32>
      %c0_34 = arith.constant 0 : index
      %c0_35 = arith.constant 0 : index
      %56 = vector.load %arg12[%c0_34, %c0_35] : memref<128x1xf32, #tpu.memory_space<vmem>>, vector<128x1xf32>
      tpu.vector_store %arg12[%c0_34, %c0_35], %55 {strides = array<i32>} : memref<128x1xf32, #tpu.memory_space<vmem>>, vector<128x1xf32>,
    } else {
    }
    %c0 = arith.constant 0 : index
    %c0_1 = arith.constant 0 : index
    %3 = vector.load %arg2[%c0, %c0_1] : memref<128x128xbf16, #tpu.memory_space<vmem>>, vector<128x128xbf16>
    %c0_2 = arith.constant 0 : index
    %c0_3 = arith.constant 0 : index
    %4 = vector.load %arg3[%c0_2, %c0_3] : memref<128x2xf32, #tpu.memory_space<vmem>>, vector<128x1xf32>
    %c0_4 = arith.constant 0 : index
    %c0_5 = arith.constant 0 : index
    %5 = vector.load %arg4[%c0_4, %c0_5] : memref<1x128xf32, #tpu.memory_space<vmem>>, vector<1x128xf32>
    %c0_6 = arith.constant 0 : index
    %6 = memref.load %arg5[%c0_6] : memref<2xf32, #tpu.memory_space<smem>>
    %c1 = arith.constant 1 : index
    %7 = memref.load %arg5[%c1] : memref<2xf32, #tpu.memory_space<smem>>
    %8 = vector.broadcast %7 : f32 to vector<128x1xf32>
    %9 = arith.mulf %8, %4 : vector<128x1xf32>
    %10 = vector.broadcast %6 : f32 to vector<1x128xf32>
    %11 = arith.mulf %10, %5 : vector<1x128xf32>
    %12 = vector.broadcast %9 : vector<128x1xf32> to vector<128x128xf32>
    %13 = vector.broadcast %11 : vector<1x128xf32> to vector<128x128xf32>
    %14 = arith.addf %12, %13 : vector<128x128xf32>
    %cst = arith.constant 0.000000e+00 : f32
    %15 = vector.broadcast %cst : f32 to vector<128x128xf32>
    %16 = arith.cmpf ogt, %14, %15 : vector<128x128xf32>
    %cst_7 = arith.constant 2.000000e-01 : f32
    %17 = vector.broadcast %cst_7 : f32 to vector<128x128xf32>
    %18 = arith.mulf %17, %14 : vector<128x128xf32>
    %19 = arith.select %16, %14, %18 : vector<128x128xi1>, vector<128x128xf32>
    %cst_8 = arith.constant 0.000000e+00 : bf16
    %20 = vector.broadcast %cst_8 : bf16 to vector<128x128xbf16>
    %21 = arith.cmpf ogt, %3, %20 : vector<128x128xbf16>
    %cst_9 = arith.constant -1.000000e+30 : f32
    %22 = vector.broadcast %cst_9 : f32 to vector<128x128xf32>
    %23 = arith.select %21, %19, %22 : vector<128x128xi1>, vector<128x128xf32>
    %c0_10 = arith.constant 0 : index
    %c0_11 = arith.constant 0 : index
    %24 = vector.load %arg10[%c0_10, %c0_11] : memref<128x1xf32, #tpu.memory_space<vmem>>, vector<128x1xf32>
    %cst_12 = arith.constant dense<0xFF800000> : vector<128xf32>
    %25 = vector.multi_reduction <maximumf>, %23, %cst_12 [1] : vector<128x128xf32> to vector<128xf32>
    %26 = vector.shape_cast %25 : vector<128xf32> to vector<128x1xf32>
    %27 = arith.maximumf %24, %26 : vector<128x1xf32>
    %28 = arith.subf %24, %27 : vector<128x1xf32>
    %29 = math.exp %28 : vector<128x1xf32>
    %30 = vector.broadcast %27 : vector<128x1xf32> to vector<128x128xf32>
    %31 = arith.subf %23, %30 : vector<128x128xf32>
    %32 = math.exp %31 : vector<128x128xf32>
    %c0_13 = arith.constant 0 : index
    %c0_14 = arith.constant 0 : index
    %33 = vector.load %arg11[%c0_13, %c0_14] : memref<128x1xf32, #tpu.memory_space<vmem>>, vector<128x1xf32>
    %34 = arith.mulf %29, %33 : vector<128x1xf32>
    %cst_15 = arith.constant dense<0.000000e+00> : vector<128xf32>
    %35 = vector.multi_reduction <add>, %32, %cst_15 [1] : vector<128x128xf32> to vector<128xf32>
    %36 = vector.shape_cast %35 : vector<128xf32> to vector<128x1xf32>
    %37 = arith.addf %34, %36 : vector<128x1xf32>
    %c0_16 = arith.constant 0 : index
    %c0_17 = arith.constant 0 : index
    %38 = vector.load %arg11[%c0_16, %c0_17] : memref<128x1xf32, #tpu.memory_space<vmem>>, vector<128x1xf32>
    tpu.vector_store %arg11[%c0_16, %c0_17], %37 {strides = array<i32>} : memref<128x1xf32, #tpu.memory_space<vmem>>, vector<128x1xf32>,
    %c0_18 = arith.constant 0 : index
    %c0_19 = arith.constant 0 : index
    %39 = vector.load %arg12[%c0_18, %c0_19] : memref<128x1xf32, #tpu.memory_space<vmem>>, vector<128x1xf32>
    %40 = arith.mulf %29, %39 : vector<128x1xf32>
    %41 = vector.broadcast %5 : vector<1x128xf32> to vector<128x128xf32>
    %42 = arith.mulf %32, %41 : vector<128x128xf32>
    %cst_20 = arith.constant dense<0.000000e+00> : vector<128xf32>
    %43 = vector.multi_reduction <add>, %42, %cst_20 [1] : vector<128x128xf32> to vector<128xf32>
    %44 = vector.shape_cast %43 : vector<128xf32> to vector<128x1xf32>
    %45 = arith.addf %40, %44 : vector<128x1xf32>
    %c0_21 = arith.constant 0 : index
    %c0_22 = arith.constant 0 : index
    %46 = vector.load %arg12[%c0_21, %c0_22] : memref<128x1xf32, #tpu.memory_space<vmem>>, vector<128x1xf32>
    tpu.vector_store %arg12[%c0_21, %c0_22], %45 {strides = array<i32>} : memref<128x1xf32, #tpu.memory_space<vmem>>, vector<128x1xf32>,
    %c0_23 = arith.constant 0 : index
    %c0_24 = arith.constant 0 : index
    %47 = vector.load %arg10[%c0_23, %c0_24] : memref<128x1xf32, #tpu.memory_space<vmem>>, vector<128x1xf32>
    tpu.vector_store %arg10[%c0_23, %c0_24], %27 {strides = array<i32>} : memref<128x1xf32, #tpu.memory_space<vmem>>, vector<128x1xf32>,
    %c0_i32_25 = arith.constant 0 : i32
    %48 = arith.cmpi eq, %arg1, %c0_i32_25 : i32
    %49 = arith.extui %48 : i1 to i32
    %c0_i32_26 = arith.constant 0 : i32
    %50 = arith.cmpi ne, %49, %c0_i32_26 : i32
    scf.if %50 {
      %c0_27 = arith.constant 0 : index
      %c0_28 = arith.constant 0 : index
      %51 = vector.load %arg12[%c0_27, %c0_28] : memref<128x1xf32, #tpu.memory_space<vmem>>, vector<128x1xf32>
      %c0_29 = arith.constant 0 : index
      %c0_30 = arith.constant 0 : index
      %52 = vector.load %arg11[%c0_29, %c0_30] : memref<128x1xf32, #tpu.memory_space<vmem>>, vector<128x1xf32>
      %53 = tpu.reciprocal %52 {approx = true} : vector<128x1xf32> -> vector<128x1xf32>
      %54 = arith.mulf %51, %53 : vector<128x1xf32>
      %c0_31 = arith.constant 0 : index
      %c0_32 = arith.constant 0 : index
      %55 = vector.load %arg6[%c0_31, %c0_32] : memref<1x16xf32, #tpu.memory_space<vmem>>, vector<1x16xf32>
      %56 = vector.broadcast %54 : vector<128x1xf32> to vector<128x16xf32>
      %57 = vector.broadcast %55 : vector<1x16xf32> to vector<128x16xf32>
      %58 = arith.mulf %56, %57 : vector<128x16xf32>
      %c0_33 = arith.constant 0 : index
      %c0_34 = arith.constant 0 : index
      %59 = vector.load %arg7[%c0_33, %c0_34] : memref<1x16xf32, #tpu.memory_space<vmem>>, vector<1x16xf32>
      %60 = vector.broadcast %59 : vector<1x16xf32> to vector<128x16xf32>
      %61 = arith.addf %58, %60 : vector<128x16xf32>
      %cst_35 = arith.constant 0.000000e+00 : f32
      %62 = vector.broadcast %cst_35 : f32 to vector<128x16xf32>
      %63 = arith.cmpf ogt, %61, %62 : vector<128x16xf32>
      %64 = math.exp %61 : vector<128x16xf32>
      %cst_36 = arith.constant 1.000000e+00 : f32
      %65 = vector.broadcast %cst_36 : f32 to vector<128x16xf32>
      %66 = arith.subf %64, %65 : vector<128x16xf32>
      %67 = arith.select %63, %61, %66 : vector<128x16xi1>, vector<128x16xf32>
      %c0_37 = arith.constant 0 : index
      %c1_38 = arith.constant 1 : index
      %68 = vector.load %arg3[%c0_37, %c1_38] : memref<128x2xf32, #tpu.memory_space<vmem>>, vector<128x1xf32>
      %c0_39 = arith.constant 0 : index
      %c0_40 = arith.constant 0 : index
      %69 = vector.load %arg8[%c0_39, %c0_40] : memref<16x32xf32, #tpu.memory_space<vmem>>, vector<16x32xf32>
      %cst_41 = arith.constant dense<0.000000e+00> : vector<128x32xf32>
      %70 = tpu.matmul %67, %69, %cst_41 {dimension_numbers = #tpu.dot_dimension_numbers<[1], [0], [0], [1], [0, 0, 1, 1], [], []>} : vector<128x16xf32>, vector<16x32xf32>, vector<128x32xf32> -> vector<128x32xf32>
      %71 = vector.broadcast %68 : vector<128x1xf32> to vector<128x32xf32>
      %72 = arith.mulf %71, %70 : vector<128x32xf32>
      %73 = arith.truncf %72 : vector<128x32xf32> to vector<128x32xbf16>
      %c0_42 = arith.constant 0 : index
      %c0_43 = arith.constant 0 : index
      %74 = vector.load %arg9[%c0_42, %c0_43] : memref<128x32xbf16, #tpu.memory_space<vmem>>, vector<128x32xbf16>
      tpu.vector_store %arg9[%c0_42, %c0_43], %73 {strides = array<i32>} : memref<128x32xbf16, #tpu.memory_space<vmem>>, vector<128x32xbf16>,
    } else {
    }
    return
  }
  func.func @transform_0(%arg0: i32, %arg1: i32) -> (i32, i32) {
    %c0_i32 = arith.constant 0 : i32
    return %arg0, %arg1 : i32, i32
  }
  func.func @transform_1(%arg0: i32, %arg1: i32) -> (i32, i32) {
    %c0_i32 = arith.constant 0 : i32
    %c0_i32_0 = arith.constant 0 : i32
    return %arg0, %c0_i32 : i32, i32
  }
  func.func @transform_2(%arg0: i32, %arg1: i32) -> (i32, i32) {
    %c0_i32 = arith.constant 0 : i32
    %c0_i32_0 = arith.constant 0 : i32
    return %c0_i32, %arg1 : i32, i32
  }
  func.func @transform_3(%arg0: i32, %arg1: i32) -> i32 {
    %c0_i32 = arith.constant 0 : i32
    %c0_i32_0 = arith.constant 0 : i32
    return %c0_i32 : i32
  }
  func.func @transform_4(%arg0: i32, %arg1: i32) -> (i32, i32) {
    %c0_i32 = arith.constant 0 : i32
    %c0_i32_0 = arith.constant 0 : i32
    %c0_i32_1 = arith.constant 0 : i32
    return %c0_i32, %c0_i32_0 : i32, i32
  }
  func.func @transform_5(%arg0: i32, %arg1: i32) -> (i32, i32) {
    %c0_i32 = arith.constant 0 : i32
    %c0_i32_0 = arith.constant 0 : i32
    %c0_i32_1 = arith.constant 0 : i32
    return %c0_i32, %c0_i32_0 : i32, i32
  }
  func.func @transform_6(%arg0: i32, %arg1: i32) -> (i32, i32) {
    %c0_i32 = arith.constant 0 : i32
    %c0_i32_0 = arith.constant 0 : i32
    %c0_i32_1 = arith.constant 0 : i32
    return %c0_i32, %c0_i32_0 : i32, i32
  }
  func.func @transform_7(%arg0: i32, %arg1: i32) -> (i32, i32) {
    %c0_i32 = arith.constant 0 : i32
    %c0_i32_0 = arith.constant 0 : i32
    return %arg0, %c0_i32 : i32, i32
  }
}

</mosaic_0001>

<bundles_post_ra>
// kernel: tpu_custom_call.1
= control target key start
LH: loop header
LB: loop body
LE: loop exit
PB: predicated region body
PF: predicated region fallthrough
CT: control target
= control target key end

     0   :  { %12 = vsyncpa [#allocation6], 0  ;;  %s2749_s0 = inlined_call_operand.vmem [shape: bf16[128,128], index: 0, kind: input, shape index: {}]   ;;  %s2750_s1 = inlined_call_operand.vmem [shape: f32[128,2], index: 1, kind: input, shape index: {}]   ;;  %s2751_s2 = inlined_call_operand.vmem [shape: f32[1,128], index: 2, kind: input, shape index: {}]   ;;  %s2752_s3 = inlined_call_operand.vmem [shape: f32[2], index: 3, kind: input, shape index: {}]   ;;  %s2753_s4 = inlined_call_operand.vmem [shape: f32[1,16], index: 4, kind: input, shape index: {}]   ;;  %s2754_s5 = inlined_call_operand.vmem [shape: f32[1,16], index: 5, kind: input, shape index: {}]   ;;  %s2755_s6 = inlined_call_operand.vmem [shape: f32[16,32], index: 6, kind: input, shape index: {}]   ;;  %s2756_s7 = inlined_call_operand.vmem [shape: bf16[128,32], index: 7, kind: output, shape index: {}]  }
   0x1   :  { %s25_s26 = sshll.u32 %s2752_s3, 4  ;;  %s26_s26 = int_to_ptr.vmem [resolvable:$true] %s25_s26 }
   0x2   :  { %s1771_s27 = scalar_lea.vmem %s26_s26, 16  ;;  %p1776_p1 = scmp.lt.s32.totalorder %s26_s26, %s26_s26 }
   0x3   :  { %p1772_p0 = scmp.ne.s32.totalorder %s26_s26, %s1771_s27  ;;  %p1777_p2 = scmp.lt.s32.totalorder %s1771_s27, %s1771_s27 }
   0x5   :  { %p1778_p3 = por %p1777_p2, %p1776_p1 }
   0x7   :  { %p1779_p4 = pnand %p1778_p3, %p1772_p0 }
   0x9   :  { %1782 = shalt.err (!%p1779_p4)
}
   0xa   :  { %s1785_s28 = smov [#allocation5]  }
   0xb   :  { %28 = dma.vmem_to_smem %s26_s26, 16, %s1785_s28, [#allocation6]  }
   0xc   :  { %1783 = dma.done.wait [#allocation6], 16  }
   0xd   :  { %1784 = vsyncadd [#allocation6], 4294967280 }
   0xe   :  { %38 = sfence }
   0xf   :  { %s1517_s29 = sld [smem:[#allocation5 + $0x1]]  ;;  %v1786_v0 = vmov 0   ;;  %v112_v1 = vld [vmem:[%s2750_s1 + $0x8] sm:$0xff]  ;;  %v111_v2 = vld [vmem:[%s2750_s1] sm:$0xff]  ;;  %v121_v10 = vld [vmem:[%s2750_s1 + $0x50] sm:$0xff]  ;;  %v230_v34 = vlaneseq }
  0x10   :  { %1640 = vset.pattern.permute.xlu1 %v1786_v0  ;;  %1639 = vset.pattern.permute.xlu0 %v1786_v0  ;;  %v120_v4 = vld [vmem:[%s2750_s1 + $0x48] sm:$0xff]  ;;  %v119_v5 = vld [vmem:[%s2750_s1 + $0x40] sm:$0xff]  ;;  %v113_v11 = vld [vmem:[%s2750_s1 + $0x10] sm:$0xff]  ;;  %s128_s14 = sld [smem:[#allocation5]] }
  0x11   :  { %v122_v14 = vld [vmem:[%s2750_s1 + $0x58] sm:$0xff]  ;;  %v123_v18 = vld [vmem:[%s2750_s1 + $0x60] sm:$0xff]  ;;  %v124_v22 = vld [vmem:[%s2750_s1 + $0x68] sm:$0xff]  ;;  %v1886_v36 = vshrl.u32 %v230_v34, 7 }
  0x12   :  { %v114_v15 = vld [vmem:[%s2750_s1 + $0x18] sm:$0xff]  ;;  %v115_v19 = vld [vmem:[%s2750_s1 + $0x20] sm:$0xff]  ;;  %v116_v23 = vld [vmem:[%s2750_s1 + $0x28] sm:$0xff] }
  0x13   :  { %v125_v26 = vld [vmem:[%s2750_s1 + $0x70] sm:$0xff]  ;;  %v126_v30 = vld [vmem:[%s2750_s1 + $0x78] sm:$0xff]  ;;  %v95_v35 = vld [vmem:[%s2749_s0] sm:$0xf]  ;;  %v2757_v44 = vsub.s32 0, %v1886_v36 }
  0x14   :  { %v117_v27 = vld [vmem:[%s2750_s1 + $0x30] sm:$0xff]  ;;  %v118_v31 = vld [vmem:[%s2750_s1 + $0x38] sm:$0xff]  ;;  %v1891_v37 = vld [vmem:[%s2751_s2] sm:$0x1]  ;;  %vm299_vm0 = vcmp.gt.bf16.partialorder %v95_v35, 0 }
  0x15   :  { %v130_v3 = vstv %s1517_s29  ;;  %v103_v39 = vld [vmem:[%s2749_s0 + $0x20] sm:$0xf]  ;;  %v96_v40 = vld [vmem:[%s2749_s0 + $0x4] sm:$0xf]  ;;  %v97_v41 = vld [vmem:[%s2749_s0 + $0x8] sm:$0xf] }
  0x16   :  { %v132_v6 = vmul.f32 %v130_v3, %v112_v1  ;;  %v131_v7 = vmul.f32 %v130_v3, %v111_v2  ;;  %v140_v8 = vmul.f32 %v130_v3, %v120_v4  ;;  %v139_v9 = vmul.f32 %v130_v3, %v119_v5  ;;  %v104_v42 = vld [vmem:[%s2749_s0 + $0x24] sm:$0xf]  ;;  %v98_v46 = vld [vmem:[%s2749_s0 + $0xc] sm:$0xf]  ;;  %v105_v47 = vld [vmem:[%s2749_s0 + $0x28] sm:$0xf] }
  0x17   :  { %v141_v12 = vmul.f32 %v130_v3, %v121_v10  ;;  %v133_v13 = vmul.f32 %v130_v3, %v113_v11  ;;  %v142_v16 = vmul.f32 %v130_v3, %v122_v14  ;;  %v134_v17 = vmul.f32 %v130_v3, %v114_v15  ;;  %v106_v49 = vld [vmem:[%s2749_s0 + $0x2c] sm:$0xf]  ;;  %v99_v57 = vld [vmem:[%s2749_s0 + $0x10] sm:$0xf]  ;;  %v108_v35 = vld [vmem:[%s2749_s0 + $0x34] sm:$0xf] }
  0x18   :  { %156 = vperm.xlu1 %1640, %v132_v6   ;;  %151 = vperm.xlu0 %1639, %v131_v7   ;;  %v143_v20 = vmul.f32 %v130_v3, %v123_v18  ;;  %v135_v21 = vmul.f32 %v130_v3, %v115_v19  ;;  %v144_v24 = vmul.f32 %v130_v3, %v124_v22  ;;  %v147_v38 = vstv %s128_s14  ;;  %v107_v63 = vld [vmem:[%s2749_s0 + $0x30] sm:$0xf]  ;;  %v100_v22 = vld [vmem:[%s2749_s0 + $0x14] sm:$0xf] }
  0x19   :  { %v136_v25 = vmul.f32 %v130_v3, %v116_v23  ;;  %v145_v28 = vmul.f32 %v130_v3, %v125_v26  ;;  %v137_v29 = vmul.f32 %v130_v3, %v117_v27  ;;  %v146_v32 = vmul.f32 %v130_v3, %v126_v30 }
  0x1a   :  { %v138_v33 = vmul.f32 %v130_v3, %v118_v31  ;;  %v148_v43 = vmul.f32 %v147_v38, %v1891_v37  ;;  %v315_v45 = vsel %vm299_vm0, 65537, %v1786_v0  ;;  %vm307_vm1 = vcmp.gt.bf16.partialorder %v103_v39, 0 }
  0x1b   :  { %vm300_vm2 = vcmp.gt.bf16.partialorder %v96_v40, 0  ;;  %vm301_vm3 = vcmp.gt.bf16.partialorder %v97_v41, 0  ;;  %vm308_vm4 = vcmp.gt.bf16.partialorder %v104_v42, 0  ;;  %v331_v48 = vunpack.c.l.b16 %v315_v45  ;;  %v101_v42 = vld [vmem:[%s2749_s0 + $0x18] sm:$0xf] }
  0x1c   :  { %196 = vperm.xlu1 %1640, %v140_v8   ;;  %191 = vperm.xlu0 %1639, %v139_v9   ;;  %vm302_vm5 = vcmp.gt.bf16.partialorder %v98_v46, 0  ;;  %vm309_vm6 = vcmp.gt.bf16.partialorder %v105_v47, 0  ;;  %v1919_v50 = vrot.slane %v148_v43, %v2757_v44  ;;  %v323_v51 = vsel %vm307_vm1, 65537, %v1786_v0 }
  0x1d   :  { %v316_v52 = vsel %vm300_vm2, 65537, %v1786_v0  ;;  %v317_v53 = vsel %vm301_vm3, 65537, %v1786_v0  ;;  %v324_v54 = vsel %vm308_vm4, 65537, %v1786_v0  ;;  %v318_v55 = vsel %vm302_vm5, 65537, %v1786_v0 }
  0x1e   :  { %v325_v56 = vsel %vm309_vm6, 65537, %v1786_v0  ;;  %vm310_vm7 = vcmp.gt.bf16.partialorder %v106_v49, 0  ;;  %v339_v60 = vunpack.c.l.b16 %v323_v51  ;;  %v332_v61 = vunpack.c.l.b16 %v316_v52 }
  0x1f   :  { %v333_v62 = vunpack.c.l.b16 %v317_v53  ;;  %vm1935_vm8 = vcmp.ne.s32.totalorder %v331_v48, 0  ;;  %v340_v4 = vunpack.c.l.b16 %v324_v54  ;;  %v334_v5 = vunpack.c.l.b16 %v318_v55 }
  0x20   :  { %201 = vperm.xlu1 %1640, %v141_v12   ;;  %161 = vperm.xlu0 %1639, %v133_v13   ;;  %v341_v6 = vunpack.c.l.b16 %v325_v56  ;;  %vm303_vm9 = vcmp.gt.bf16.partialorder %v99_v57, 0  ;;  %v1940_v7 = vsel %vm310_vm7, 65537, %v1786_v0  ;;  %vm311_vm11 = vcmp.gt.bf16.partialorder %v107_v63, 0  ;;  %v109_v56 = vld [vmem:[%s2749_s0 + $0x38] sm:$0xf] }
  0x21   :  { %vm1942_vm12 = vcmp.ne.s32.totalorder %v339_v60, 0  ;;  %vm1946_vm14 = vcmp.ne.s32.totalorder %v332_v61, 0  ;;  %vm1950_vm15 = vcmp.ne.s32.totalorder %v333_v62, 0  ;;  %v319_v18 = vsel %vm303_vm9, 65537, %v1786_v0 }
  0x22   :  { %vm1961_vm0 = vcmp.ne.s32.totalorder %v340_v4, 0  ;;  %v1970_v23 = vsel %vm311_vm11, 65537, %v1786_v0  ;;  %vm1973_vm2 = vcmp.ne.s32.totalorder %v334_v5, 0  ;;  %vm1977_vm3 = vcmp.ne.s32.totalorder %v341_v6, 0 }
  0x23   :  { %v335_v31 = vunpack.c.l.b16 %v319_v18  ;;  %vm46_vm5 = vcmask 7168   ;;  %vm304_vm6 = vcmp.gt.bf16.partialorder %v100_v22, 0  ;;  %v1787_v38 = vmov -1e+30  }
  0x24   :  { %206 = vperm.xlu1 %1640, %v142_v16   ;;  %166 = vperm.xlu0 %1639, %v134_v17   ;;  %47 = vst.msk [vmem:[#allocation2] sm:$0xff] %vm46_vm5, %v1787_v38  ;;  %48 = vst.msk [vmem:[#allocation2 + $0x8] sm:$0xff] %vm46_vm5, %v1787_v38  ;;  %v343_v41 = vunpack.c.l.b16 %v1970_v23  ;;  %v320_v52 = vsel %vm304_vm6, 65537, %v1786_v0  ;;  %vm312_vm11 = vcmp.gt.bf16.partialorder %v108_v35, 0 }
  0x25   :  { %49 = vst.msk [vmem:[#allocation2 + $0x10] sm:$0xff] %vm46_vm5, %v1787_v38  ;;  %50 = vst.msk [vmem:[#allocation2 + $0x18] sm:$0xff] %vm46_vm5, %v1787_v38  ;;  %v328_v4 = vsel %vm312_vm11, 65537, %v1786_v0 }
  0x26   :  { %51 = vst.msk [vmem:[#allocation2 + $0x20] sm:$0xff] %vm46_vm5, %v1787_v38  ;;  %52 = vst.msk [vmem:[#allocation2 + $0x28] sm:$0xff] %vm46_vm5, %v1787_v38  ;;  %v344_v18 = vunpack.c.l.b16 %v328_v4 }
  0x27   :  { %53 = vst.msk [vmem:[#allocation2 + $0x30] sm:$0xff] %vm46_vm5, %v1787_v38  ;;  %54 = vst.msk [vmem:[#allocation2 + $0x38] sm:$0xff] %vm46_vm5, %v1787_v38 }
  0x28   :  { %211 = vperm.xlu1 %1640, %v143_v20   ;;  %171 = vperm.xlu0 %1639, %v135_v21   ;;  %v342_v21 = vunpack.c.l.b16 %v1940_v7  ;;  %55 = vst.msk [vmem:[#allocation2 + $0x40] sm:$0xff] %vm46_vm5, %v1787_v38  ;;  %56 = vst.msk [vmem:[#allocation2 + $0x48] sm:$0xff] %vm46_vm5, %v1787_v38 }
  0x29   :  { %57 = vst.msk [vmem:[#allocation2 + $0x50] sm:$0xff] %vm46_vm5, %v1787_v38  ;;  %58 = vst.msk [vmem:[#allocation2 + $0x58] sm:$0xff] %vm46_vm5, %v1787_v38 }
  0x2a   :  { %59 = vst.msk [vmem:[#allocation2 + $0x60] sm:$0xff] %vm46_vm5, %v1787_v38  ;;  %60 = vst.msk [vmem:[#allocation2 + $0x68] sm:$0xff] %vm46_vm5, %v1787_v38 }
  0x2b   :  { %61 = vst.msk [vmem:[#allocation2 + $0x70] sm:$0xff] %vm46_vm5, %v1787_v38  ;;  %62 = vst.msk [vmem:[#allocation2 + $0x78] sm:$0xff] %vm46_vm5, %v1787_v38 }
  0x2c   :  { %216 = vperm.xlu1 %1640, %v144_v24   ;;  %176 = vperm.xlu0 %1639, %v136_v25  }
  0x30   :  { %221 = vperm.xlu1 %1640, %v145_v28   ;;  %181 = vperm.xlu0 %1639, %v137_v29  }
  0x34   :  { %226 = vperm.xlu1 %1640, %v146_v32   ;;  %186 = vperm.xlu0 %1639, %v138_v33  }
  0x93   :  { %v157_v58 = vpop.permute.xlu1 %156  ;;  %v152_v59 = vpop.permute.xlu0 %151 }
  0x94   :  { %v236_v1 = vadd.f32 %v1919_v50, %v157_v58  ;;  %v235_v2 = vadd.f32 %v1919_v50, %v152_v59  ;;  %v102_v59 = vld [vmem:[%s2749_s0 + $0x1c] sm:$0xf] }
  0x96   :  { %vm251_vm10 = vcmp.gt.f32.partialorder %v235_v2, 0.0  ;;  %v267_v8 = vmul.f32 0.2, %v235_v2  ;;  %v268_v9 = vmul.f32 0.2, %v236_v1  ;;  %vm252_vm13 = vcmp.gt.f32.partialorder %v236_v1, 0.0 }
  0x97   :  { %v197_v10 = vpop.permute.xlu1 %196  ;;  %v192_v11 = vpop.permute.xlu0 %191 }
  0x98   :  { %v244_v15 = vadd.f32 %v1919_v50, %v197_v10  ;;  %v243_v16 = vadd.f32 %v1919_v50, %v192_v11  ;;  %v283_v17 = vsel %vm251_vm10, %v235_v2, %v267_v8  ;;  %v284_v25 = vsel %vm252_vm13, %v236_v1, %v268_v9  ;;  %v110_v8 = vld [vmem:[%s2749_s0 + $0x3c] sm:$0xf] }
  0x99   :  { %v1959_v19 = vsel %vm1935_vm8, %v283_v17, -1e+30  ;;  %v2008_v40 = vsel %vm1946_vm14, %v284_v25, -1e+30  ;;  %vm2017_vm8 = vcmp.ne.s32.totalorder %v342_v21, 0  ;;  %vm2021_vm10 = vcmp.ne.s32.totalorder %v335_v31, 0 }
  0x9a   :  { %395 = vmax.xlane.f32.xlu0 %v1959_v19  ;;  %vm259_vm1 = vcmp.gt.f32.partialorder %v243_v16, 0.0  ;;  %v275_v24 = vmul.f32 0.2, %v243_v16  ;;  %v276_v26 = vmul.f32 0.2, %v244_v15  ;;  %vm260_vm4 = vcmp.gt.f32.partialorder %v244_v15, 0.0 }
  0x9b   :  { %v202_v29 = vpop.permute.xlu1 %201  ;;  %v162_v30 = vpop.permute.xlu0 %161  ;;  %v336_v2 = vunpack.c.l.b16 %v320_v52  ;;  %vm314_vm6 = vcmp.gt.bf16.partialorder %v110_v8, 0  ;;  %v2181_v8 = vld [vmem:[#allocation2] sm:$0xff] }
  0x9c   :  { %v245_v32 = vadd.f32 %v1919_v50, %v202_v29  ;;  %v237_v33 = vadd.f32 %v1919_v50, %v162_v30  ;;  %v291_v34 = vsel %vm259_vm1, %v243_v16, %v275_v24  ;;  %v292_v45 = vsel %vm260_vm4, %v244_v15, %v276_v26 }
  0x9d   :  { %v2004_v39 = vsel %vm1942_vm12, %v291_v34, -1e+30  ;;  %vm305_vm12 = vcmp.gt.bf16.partialorder %v101_v42, 0  ;;  %v2038_v58 = vsel %vm1961_vm0, %v292_v45, -1e+30  ;;  %vm313_vm0 = vcmp.gt.bf16.partialorder %v109_v56, 0 }
  0x9e   :  { %411 = vmax.xlane.f32.xlu1 %v2004_v39  ;;  %397 = vmax.xlane.f32.xlu0 %v2008_v40  ;;  %vm253_vm7 = vcmp.gt.f32.partialorder %v237_v33, 0.0  ;;  %v269_v43 = vmul.f32 0.2, %v237_v33  ;;  %v277_v46 = vmul.f32 0.2, %v245_v32  ;;  %vm261_vm9 = vcmp.gt.f32.partialorder %v245_v32, 0.0 }
  0x9f   :  { %v207_v48 = vpop.permute.xlu1 %206  ;;  %v167_v49 = vpop.permute.xlu0 %166  ;;  %v321_v11 = vsel %vm305_vm12, 65537, %v1786_v0  ;;  %vm306_vm1 = vcmp.gt.bf16.partialorder %v102_v59, 0  ;;  %v329_v20 = vsel %vm313_vm0, 65537, %v1786_v0  ;;  %v2110_v47 = vsel %vm314_vm6, 65537, %v1786_v0 }
  0xa0   :  { %v246_v53 = vadd.f32 %v1919_v50, %v207_v48  ;;  %v238_v54 = vadd.f32 %v1919_v50, %v167_v49  ;;  %v285_v55 = vsel %vm253_vm7, %v237_v33, %v269_v43  ;;  %v293_v61 = vsel %vm261_vm9, %v245_v32, %v277_v46 }
  0xa1   :  { %v2034_v57 = vsel %vm1950_vm15, %v285_v55, -1e+30  ;;  %vm2046_vm15 = vcmp.ne.s32.totalorder %v343_v41, 0  ;;  %v2063_v10 = vsel %vm1977_vm3, %v293_v61, -1e+30  ;;  %v337_v24 = vunpack.c.l.b16 %v321_v11 }
  0xa2   :  { %399 = vmax.xlane.f32.xlu1 %v2034_v57  ;;  %413 = vmax.xlane.f32.xlu0 %v2038_v58  ;;  %vm254_vm13 = vcmp.gt.f32.partialorder %v238_v54, 0.0  ;;  %v270_v60 = vmul.f32 0.2, %v238_v54  ;;  %v278_v62 = vmul.f32 0.2, %v246_v53  ;;  %vm262_vm14 = vcmp.gt.f32.partialorder %v246_v53, 0.0 }
  0xa3   :  { %v212_v63 = vpop.permute.xlu1 %211  ;;  %v172_v1 = vpop.permute.xlu0 %171  ;;  %v322_v27 = vsel %vm306_vm1, 65537, %v1786_v0  ;;  %v345_v34 = vunpack.c.l.b16 %v329_v20  ;;  %v346_v59 = vunpack.c.l.b16 %v2110_v47  ;;  %v2243_v47 = vld [vmem:[#allocation2 + $0x58] sm:$0xff] }
  0xa4   :  { %v247_v5 = vadd.f32 %v1919_v50, %v212_v63  ;;  %v239_v6 = vadd.f32 %v1919_v50, %v172_v1  ;;  %v286_v7 = vsel %vm254_vm13, %v238_v54, %v270_v60  ;;  %v294_v13 = vsel %vm262_vm14, %v246_v53, %v278_v62 }
  0xa5   :  { %v2059_v9 = vsel %vm1973_vm2, %v286_v7, -1e+30  ;;  %vm2070_vm2 = vcmp.ne.s32.totalorder %v336_v2, 0  ;;  %v2084_v26 = vsel %vm2017_vm8, %v294_v13, -1e+30  ;;  %vm2096_vm8 = vcmp.ne.s32.totalorder %v337_v24, 0 }
  0xa6   :  { %401 = vmax.xlane.f32.xlu1 %v2059_v9  ;;  %415 = vmax.xlane.f32.xlu0 %v2063_v10  ;;  %vm255_vm4 = vcmp.gt.f32.partialorder %v239_v6, 0.0  ;;  %v271_v12 = vmul.f32 0.2, %v239_v6  ;;  %v279_v14 = vmul.f32 0.2, %v247_v5  ;;  %vm263_vm3 = vcmp.gt.f32.partialorder %v247_v5, 0.0 }
  0xa7   :  { %v217_v15 = vpop.permute.xlu1 %216  ;;  %v177_v16 = vpop.permute.xlu0 %176  ;;  %v338_v46 = vunpack.c.l.b16 %v322_v27  ;;  %vm2114_vm13 = vcmp.ne.s32.totalorder %v345_v34, 0  ;;  %v1788_v2 = vmov 0.0   ;;  %vm362_vm1 = vcmp.ne.s32.totalorder %v346_v59, 0  ;;  %v2186_v13 = vld [vmem:[#allocation2 + $0x40] sm:$0xff] }
  0xa8   :  { %v248_v21 = vadd.f32 %v1919_v50, %v217_v15  ;;  %v240_v22 = vadd.f32 %v1919_v50, %v177_v16  ;;  %v287_v23 = vsel %vm255_vm4, %v239_v6, %v271_v12  ;;  %v295_v29 = vsel %vm263_vm3, %v247_v5, %v279_v14  ;;  %63 = vst.msk [vmem:[#allocation3] sm:$0xff] %vm46_vm5, %v1788_v2  ;;  %v2188_v14 = vld [vmem:[#allocation2 + $0x8] sm:$0xff] }
  0xa9   :  { %v2080_v25 = vsel %vm2021_vm10, %v287_v23, -1e+30  ;;  %vm2090_vm10 = vcmp.ne.s32.totalorder %v344_v18, 0  ;;  %v2106_v45 = vsel %vm2046_vm15, %v295_v29, -1e+30  ;;  %vm2129_vm14 = vcmp.ne.s32.totalorder %v338_v46, 0 }
  0xaa   :  { %403 = vmax.xlane.f32.xlu1 %v2080_v25  ;;  %417 = vmax.xlane.f32.xlu0 %v2084_v26  ;;  %vm256_vm7 = vcmp.gt.f32.partialorder %v240_v22, 0.0  ;;  %v272_v28 = vmul.f32 0.2, %v240_v22  ;;  %v280_v30 = vmul.f32 0.2, %v248_v21  ;;  %vm264_vm9 = vcmp.gt.f32.partialorder %v248_v21, 0.0 }
  0xab   :  { %v222_v31 = vpop.permute.xlu1 %221  ;;  %v182_v32 = vpop.permute.xlu0 %181  ;;  %64 = vst.msk [vmem:[#allocation3 + $0x8] sm:$0xff] %vm46_vm5, %v1788_v2  ;;  %65 = vst.msk [vmem:[#allocation3 + $0x10] sm:$0xff] %vm46_vm5, %v1788_v2  ;;  %v2241_v46 = vld [vmem:[#allocation2 + $0x20] sm:$0xff]  ;;  %vm1141_vm4 = vcmask 130048  }
  0xac   :  { %v249_v35 = vadd.f32 %v1919_v50, %v222_v31  ;;  %v241_v38 = vadd.f32 %v1919_v50, %v182_v32  ;;  %v288_v41 = vsel %vm256_vm7, %v240_v22, %v272_v28  ;;  %v296_v49 = vsel %vm264_vm9, %v248_v21, %v280_v30  ;;  %66 = vst.msk [vmem:[#allocation3 + $0x18] sm:$0xff] %vm46_vm5, %v1788_v2  ;;  %v2201_v21 = vld [vmem:[#allocation2 + $0x10] sm:$0xff]  ;;  %v2203_v22 = vld [vmem:[#allocation2 + $0x48] sm:$0xff]  ;;  %v2221_v31 = vld [vmem:[#allocation2 + $0x18] sm:$0xff] }
  0xad   :  { %v2102_v43 = vsel %vm2070_vm2, %v288_v41, -1e+30  ;;  %v2127_v61 = vsel %vm2090_vm10, %v296_v49, -1e+30  ;;  %67 = vst.msk [vmem:[#allocation3 + $0x20] sm:$0xff] %vm46_vm5, %v1788_v2  ;;  %68 = vst.msk [vmem:[#allocation3 + $0x28] sm:$0xff] %vm46_vm5, %v1788_v2 }
  0xae   :  { %405 = vmax.xlane.f32.xlu1 %v2102_v43  ;;  %419 = vmax.xlane.f32.xlu0 %v2106_v45  ;;  %vm257_vm11 = vcmp.gt.f32.partialorder %v241_v38, 0.0  ;;  %v273_v48 = vmul.f32 0.2, %v241_v38  ;;  %v281_v51 = vmul.f32 0.2, %v249_v35  ;;  %vm265_vm12 = vcmp.gt.f32.partialorder %v249_v35, 0.0 }
  0xaf   :  { %v227_v52 = vpop.permute.xlu1 %226  ;;  %v187_v53 = vpop.permute.xlu0 %186  ;;  %69 = vst.msk [vmem:[#allocation3 + $0x30] sm:$0xff] %vm46_vm5, %v1788_v2  ;;  %70 = vst.msk [vmem:[#allocation3 + $0x38] sm:$0xff] %vm46_vm5, %v1788_v2  ;;  %v2223_v32 = vld [vmem:[#allocation2 + $0x50] sm:$0xff] }
  0xb0   :  { %v250_v55 = vadd.f32 %v1919_v50, %v227_v52  ;;  %v242_v0 = vadd.f32 %v1919_v50, %v187_v53  ;;  %v289_v56 = vsel %vm257_vm11, %v241_v38, %v273_v48  ;;  %v297_v50 = vsel %vm265_vm12, %v249_v35, %v281_v51  ;;  %71 = vst.msk [vmem:[#allocation3 + $0x40] sm:$0xff] %vm46_vm5, %v1788_v2 }
  0xb1   :  { %v2123_v60 = vsel %vm2096_vm8, %v289_v56, -1e+30  ;;  %72 = vst.msk [vmem:[#allocation3 + $0x48] sm:$0xff] %vm46_vm5, %v1788_v2  ;;  %73 = vst.msk [vmem:[#allocation3 + $0x50] sm:$0xff] %vm46_vm5, %v1788_v2  ;;  %v2174_v5 = vsel %vm2114_vm13, %v297_v50, -1e+30 }
  0xb2   :  { %v282_v63 = vmul.f32 0.2, %v250_v55  ;;  %v274_v1 = vmul.f32 0.2, %v242_v0  ;;  %407 = vmax.xlane.f32.xlu1 %v2123_v60  ;;  %421 = vmax.xlane.f32.xlu0 %v2127_v61  ;;  %vm258_vm15 = vcmp.gt.f32.partialorder %v242_v0, 0.0  ;;  %74 = vst.msk [vmem:[#allocation3 + $0x58] sm:$0xff] %vm46_vm5, %v1788_v2 }
  0xb3   :  { %75 = vst.msk [vmem:[#allocation3 + $0x60] sm:$0xff] %vm46_vm5, %v1788_v2  ;;  %76 = vst.msk [vmem:[#allocation3 + $0x68] sm:$0xff] %vm46_vm5, %v1788_v2  ;;  %vm266_vm0 = vcmp.gt.f32.partialorder %v250_v55, 0.0 }
  0xb4   :  { %77 = vst.msk [vmem:[#allocation3 + $0x70] sm:$0xff] %vm46_vm5, %v1788_v2  ;;  %78 = vst.msk [vmem:[#allocation3 + $0x78] sm:$0xff] %vm46_vm5, %v1788_v2  ;;  %v290_v3 = vsel %vm258_vm15, %v242_v0, %v274_v1  ;;  %v298_v6 = vsel %vm266_vm0, %v250_v55, %v282_v63  ;;  %v2261_v55 = vld [vmem:[#allocation2 + $0x28] sm:$0xff]  ;;  %v2263_v0 = vld [vmem:[#allocation2 + $0x60] sm:$0xff] }
  0xb5   :  { %79 = vst.msk [vmem:[#allocation4] sm:$0xff] %vm46_vm5, %v1788_v2  ;;  %80 = vst.msk [vmem:[#allocation4 + $0x8] sm:$0xff] %vm46_vm5, %v1788_v2  ;;  %v2170_v4 = vsel %vm2129_vm14, %v290_v3, -1e+30  ;;  %v2178_v7 = vsel %vm362_vm1, %v298_v6, -1e+30 }
  0xb6   :  { %81 = vst.msk [vmem:[#allocation4 + $0x10] sm:$0xff] %vm46_vm5, %v1788_v2  ;;  %82 = vst.msk [vmem:[#allocation4 + $0x18] sm:$0xff] %vm46_vm5, %v1788_v2  ;;  %409 = vmax.xlane.f32.xlu1 %v2170_v4  ;;  %423 = vmax.xlane.f32.xlu0 %v2174_v5  ;;  %v2283_v3 = vld [vmem:[#allocation2 + $0x68] sm:$0xff] }
  0xb7   :  { %83 = vst.msk [vmem:[#allocation4 + $0x20] sm:$0xff] %vm46_vm5, %v1788_v2  ;;  %84 = vst.msk [vmem:[#allocation4 + $0x28] sm:$0xff] %vm46_vm5, %v1788_v2 }
  0xb8   :  { %85 = vst.msk [vmem:[#allocation4 + $0x30] sm:$0xff] %vm46_vm5, %v1788_v2  ;;  %86 = vst.msk [vmem:[#allocation4 + $0x38] sm:$0xff] %vm46_vm5, %v1788_v2 }
  0xb9   :  { %87 = vst.msk [vmem:[#allocation4 + $0x40] sm:$0xff] %vm46_vm5, %v1788_v2  ;;  %88 = vst.msk [vmem:[#allocation4 + $0x48] sm:$0xff] %vm46_vm5, %v1788_v2 }
  0xba   :  { %89 = vst.msk [vmem:[#allocation4 + $0x50] sm:$0xff] %vm46_vm5, %v1788_v2  ;;  %90 = vst.msk [vmem:[#allocation4 + $0x58] sm:$0xff] %vm46_vm5, %v1788_v2  ;;  %425 = vmax.xlane.f32.xlu0 %v2178_v7 }
  0xbb   :  { %91 = vst.msk [vmem:[#allocation4 + $0x60] sm:$0xff] %vm46_vm5, %v1788_v2  ;;  %92 = vst.msk [vmem:[#allocation4 + $0x68] sm:$0xff] %vm46_vm5, %v1788_v2 }
  0xbc   :  { %93 = vst.msk [vmem:[#allocation4 + $0x70] sm:$0xff] %vm46_vm5, %v1788_v2  ;;  %94 = vst.msk [vmem:[#allocation4 + $0x78] sm:$0xff] %vm46_vm5, %v1788_v2  ;;  %v2281_v2 = vld [vmem:[#allocation2 + $0x30] sm:$0xff] }
 0x123   :  { %v396_v11 = vpop.xlane.xlu0 %395 }
 0x124   :  { %v2184_v12 = vmax.f32 %v2181_v8, %v396_v11 }
 0x126   :  { %834 = vst.msk [vmem:[#allocation2] sm:$0xff] %vm46_vm5, %v2184_v12  ;;  %493 = vperm.xlu1 %1640, %v2184_v12  }
 0x127   :  { %v412_v16 = vpop.xlane.xlu1 %411  ;;  %v398_v17 = vpop.xlane.xlu0 %397 }
 0x128   :  { %v2196_v18 = vmax.f32 %v2186_v13, %v412_v16  ;;  %v2199_v20 = vmax.f32 %v2188_v14, %v398_v17 }
 0x12a   :  { %842 = vst.msk [vmem:[#allocation2 + $0x40] sm:$0xff] %vm46_vm5, %v2196_v18  ;;  %835 = vst.msk [vmem:[#allocation2 + $0x8] sm:$0xff] %vm46_vm5, %v2199_v20  ;;  %533 = vperm.xlu0 %1639, %v2196_v18   ;;  %498 = vperm.xlu1 %1640, %v2199_v20  }
 0x12b   :  { %v400_v27 = vpop.xlane.xlu1 %399  ;;  %v414_v28 = vpop.xlane.xlu0 %413 }
 0x12c   :  { %v2216_v29 = vmax.f32 %v2201_v21, %v400_v27  ;;  %v2219_v30 = vmax.f32 %v2203_v22, %v414_v28 }
 0x12e   :  { %836 = vst.msk [vmem:[#allocation2 + $0x10] sm:$0xff] %vm46_vm5, %v2216_v29  ;;  %843 = vst.msk [vmem:[#allocation2 + $0x48] sm:$0xff] %vm46_vm5, %v2219_v30  ;;  %503 = vperm.xlu0 %1639, %v2216_v29   ;;  %538 = vperm.xlu1 %1640, %v2219_v30  }
 0x12f   :  { %v402_v35 = vpop.xlane.xlu1 %401  ;;  %v416_v38 = vpop.xlane.xlu0 %415 }
 0x130   :  { %v2236_v41 = vmax.f32 %v2221_v31, %v402_v35  ;;  %v2239_v42 = vmax.f32 %v2223_v32, %v416_v38  ;;  %v2301_v35 = vld [vmem:[#allocation2 + $0x38] sm:$0xff]  ;;  %v2303_v38 = vld [vmem:[#allocation2 + $0x70] sm:$0xff] }
 0x132   :  { %837 = vst.msk [vmem:[#allocation2 + $0x18] sm:$0xff] %vm46_vm5, %v2236_v41  ;;  %844 = vst.msk [vmem:[#allocation2 + $0x50] sm:$0xff] %vm46_vm5, %v2239_v42  ;;  %508 = vperm.xlu0 %1639, %v2236_v41   ;;  %543 = vperm.xlu1 %1640, %v2239_v42  }
 0x133   :  { %v404_v51 = vpop.xlane.xlu1 %403  ;;  %v418_v52 = vpop.xlane.xlu0 %417 }
 0x134   :  { %v2256_v53 = vmax.f32 %v2241_v46, %v404_v51  ;;  %v2259_v54 = vmax.f32 %v2243_v47, %v418_v52  ;;  %v2321_v51 = vld [vmem:[#allocation2 + $0x78] sm:$0xff] }
 0x136   :  { %838 = vst.msk [vmem:[#allocation2 + $0x20] sm:$0xff] %vm46_vm5, %v2256_v53  ;;  %845 = vst.msk [vmem:[#allocation2 + $0x58] sm:$0xff] %vm46_vm5, %v2259_v54  ;;  %513 = vperm.xlu0 %1639, %v2256_v53   ;;  %548 = vperm.xlu1 %1640, %v2259_v54  }
 0x137   :  { %v406_v62 = vpop.xlane.xlu1 %405  ;;  %v420_v63 = vpop.xlane.xlu0 %419 }
 0x138   :  { %v2276_v1 = vmax.f32 %v2261_v55, %v406_v62  ;;  %v2279_v50 = vmax.f32 %v2263_v0, %v420_v63 }
 0x13a   :  { %839 = vst.msk [vmem:[#allocation2 + $0x28] sm:$0xff] %vm46_vm5, %v2276_v1  ;;  %846 = vst.msk [vmem:[#allocation2 + $0x60] sm:$0xff] %vm46_vm5, %v2279_v50  ;;  %518 = vperm.xlu0 %1639, %v2276_v1   ;;  %553 = vperm.xlu1 %1640, %v2279_v50  }
 0x13b   :  { %v408_v16 = vpop.xlane.xlu1 %407  ;;  %v422_v17 = vpop.xlane.xlu0 %421 }
 0x13c   :  { %v2296_v27 = vmax.f32 %v2281_v2, %v408_v16  ;;  %v2299_v28 = vmax.f32 %v2283_v3, %v422_v17 }
 0x13e   :  { %840 = vst.msk [vmem:[#allocation2 + $0x30] sm:$0xff] %vm46_vm5, %v2296_v27  ;;  %847 = vst.msk [vmem:[#allocation2 + $0x68] sm:$0xff] %vm46_vm5, %v2299_v28  ;;  %523 = vperm.xlu0 %1639, %v2296_v27   ;;  %558 = vperm.xlu1 %1640, %v2299_v28  }
 0x13f   :  { %v410_v62 = vpop.xlane.xlu1 %409  ;;  %v424_v63 = vpop.xlane.xlu0 %423 }
 0x140   :  { %v2316_v16 = vmax.f32 %v2301_v35, %v410_v62  ;;  %v2319_v17 = vmax.f32 %v2303_v38, %v424_v63 }
 0x142   :  { %841 = vst.msk [vmem:[#allocation2 + $0x38] sm:$0xff] %vm46_vm5, %v2316_v16  ;;  %848 = vst.msk [vmem:[#allocation2 + $0x70] sm:$0xff] %vm46_vm5, %v2319_v17  ;;  %528 = vperm.xlu0 %1639, %v2316_v16   ;;  %563 = vperm.xlu1 %1640, %v2319_v17  }
 0x143   :  { %v426_v62 = vpop.xlane.xlu0 %425 }
 0x144   :  { %v2334_v63 = vmax.f32 %v2321_v51, %v426_v62 }
 0x146   :  { %849 = vst.msk [vmem:[#allocation2 + $0x78] sm:$0xff] %vm46_vm5, %v2334_v63  ;;  %568 = vperm.xlu1 %1640, %v2334_v63  }
 0x1a1   :  { %v494_v11 = vpop.permute.xlu1 %493 }
 0x1a2   :  { %v571_v6 = vsub.f32 %v1959_v19, %v494_v11 }
 0x1a4   :  { %v587_v59 = vmul.f32 1.442695, %v571_v6 }
 0x1a5   :  { %v534_v56 = vpop.permute.xlu0 %533  ;;  %v499_v49 = vpop.permute.xlu1 %498 }
 0x1a6   :  { %1643 = vpow2.f32 %v587_v59  ;;  %v579_v48 = vsub.f32 %v2004_v39, %v534_v56  ;;  %v572_v62 = vsub.f32 %v2008_v40, %v499_v49 }
 0x1a8   :  { %v603_v34 = vmul.f32 1.442695, %v579_v48  ;;  %v589_v33 = vmul.f32 1.442695, %v572_v62 }
 0x1a9   :  { %v504_v24 = vpop.permute.xlu0 %503  ;;  %v539_v52 = vpop.permute.xlu1 %538 }
 0x1aa   :  { %1645 = vpow2.f32 %v603_v34  ;;  %v573_v23 = vsub.f32 %v2034_v57, %v504_v24  ;;  %v580_v15 = vsub.f32 %v2038_v58, %v539_v52 }
 0x1ab   :  { %1647 = vpow2.f32 %v589_v33 }
 0x1ac   :  { %v591_v44 = vmul.f32 1.442695, %v573_v23  ;;  %v605_v19 = vmul.f32 1.442695, %v580_v15 }
 0x1ad   :  { %v509_v6 = vpop.permute.xlu0 %508  ;;  %v544_v11 = vpop.permute.xlu1 %543 }
 0x1ae   :  { %1649 = vpow2.f32 %v591_v44  ;;  %v574_v59 = vsub.f32 %v2059_v9, %v509_v6  ;;  %v581_v39 = vsub.f32 %v2063_v10, %v544_v11 }
 0x1af   :  { %1651 = vpow2.f32 %v605_v19 }
 0x1b0   :  { %v593_v40 = vmul.f32 1.442695, %v574_v59  ;;  %v607_v48 = vmul.f32 1.442695, %v581_v39 }
 0x1b1   :  { %v514_v49 = vpop.permute.xlu0 %513  ;;  %v549_v56 = vpop.permute.xlu1 %548 }
 0x1b2   :  { %1653 = vpow2.f32 %v593_v40  ;;  %v575_v57 = vsub.f32 %v2080_v25, %v514_v49  ;;  %v582_v58 = vsub.f32 %v2084_v26, %v549_v56 }
 0x1b3   :  { %v2350_v24 = vpop.eup %1643  ;;  %1655 = vpow2.f32 %v607_v48 }
 0x1b4   :  { %v595_v15 = vmul.f32 1.442695, %v575_v57  ;;  %v609_v23 = vmul.f32 1.442695, %v582_v58  ;;  %651 = vadd.xlane.f32.xlu0 %v2350_v24 }
 0x1b5   :  { %v519_v44 = vpop.permute.xlu0 %518  ;;  %v554_v9 = vpop.permute.xlu1 %553 }
 0x1b6   :  { %1657 = vpow2.f32 %v595_v15  ;;  %v576_v10 = vsub.f32 %v2102_v43, %v519_v44  ;;  %v583_v33 = vsub.f32 %v2106_v45, %v554_v9 }
 0x1b7   :  { %v1646_v34 = vpop.eup %1645  ;;  %1659 = vpow2.f32 %v609_v23 }
 0x1b8   :  { %v1648_v52 = vpop.eup %1647  ;;  %v597_v25 = vmul.f32 1.442695, %v576_v10  ;;  %v611_v62 = vmul.f32 1.442695, %v583_v33  ;;  %667 = vadd.xlane.f32.xlu1 %v1646_v34 }
 0x1b9   :  { %653 = vadd.xlane.f32.xlu0 %v1648_v52  ;;  %v524_v26 = vpop.permute.xlu0 %523  ;;  %v559_v19 = vpop.permute.xlu1 %558 }
 0x1ba   :  { %1661 = vpow2.f32 %v597_v25  ;;  %v577_v6 = vsub.f32 %v2123_v60, %v524_v26  ;;  %v584_v11 = vsub.f32 %v2127_v61, %v559_v19 }
 0x1bb   :  { %v1650_v59 = vpop.eup %1649  ;;  %1663 = vpow2.f32 %v611_v62  ;;  %v2788_v62 = vsub.s32 0, %v1886_v36 }
 0x1bc   :  { %v1652_v39 = vpop.eup %1651  ;;  %v599_v43 = vmul.f32 1.442695, %v577_v6  ;;  %v613_v40 = vmul.f32 1.442695, %v584_v11  ;;  %655 = vadd.xlane.f32.xlu1 %v1650_v59 }
 0x1bd   :  { %669 = vadd.xlane.f32.xlu0 %v1652_v39  ;;  %v529_v45 = vpop.permute.xlu0 %528  ;;  %v564_v48 = vpop.permute.xlu1 %563  ;;  %v752_v26 = vrot.slane %v1891_v37, %v2788_v62  ;;  %v627_v62 = vld [vmem:[#allocation3 + $0x40] sm:$0xff] }
 0x1be   :  { %1665 = vpow2.f32 %v599_v43  ;;  %v578_v49 = vsub.f32 %v2170_v4, %v529_v45  ;;  %v585_v56 = vsub.f32 %v2174_v5, %v564_v48 }
 0x1bf   :  { %v1654_v57 = vpop.eup %1653  ;;  %1667 = vpow2.f32 %v613_v40  ;;  %v754_v6 = vmul.f32 %v2350_v24, %v752_v26  ;;  %v755_v43 = vmul.f32 %v1648_v52, %v752_v26  ;;  %v762_v40 = vmul.f32 %v1646_v34, %v752_v26 }
 0x1c0   :  { %v1656_v58 = vpop.eup %1655  ;;  %v601_v60 = vmul.f32 1.442695, %v578_v49  ;;  %v615_v15 = vmul.f32 1.442695, %v585_v56  ;;  %657 = vadd.xlane.f32.xlu1 %v1654_v57  ;;  %v756_v45 = vmul.f32 %v1650_v59, %v752_v26  ;;  %v763_v48 = vmul.f32 %v1652_v39, %v752_v26 }
 0x1c1   :  { %671 = vadd.xlane.f32.xlu0 %v1656_v58  ;;  %v569_v61 = vpop.permute.xlu1 %568  ;;  %v757_v36 = vmul.f32 %v1654_v57, %v752_v26  ;;  %v764_v49 = vmul.f32 %v1656_v58, %v752_v26  ;;  %v2789_v58 = vsub.f32 %v2181_v8, %v2184_v12  ;;  %v2794_v12 = vsub.f32 %v2221_v31, %v2236_v41 }
 0x1c2   :  { %1669 = vpow2.f32 %v601_v60  ;;  %v586_v23 = vsub.f32 %v2178_v7, %v569_v61  ;;  %v2790_v61 = vsub.f32 %v2186_v13, %v2196_v18  ;;  %v2798_v31 = vsub.f32 %v2261_v55, %v2276_v1 }
 0x1c3   :  { %v1658_v44 = vpop.eup %1657  ;;  %1671 = vpow2.f32 %v615_v15  ;;  %v459_v15 = vmul.f32 1.442695, %v2789_v58  ;;  %v465_v13 = vmul.f32 1.442695, %v2794_v12  ;;  %v2800_v55 = vsub.f32 %v2281_v2, %v2296_v27  ;;  %v628_v27 = vld [vmem:[#allocation3 + $0x48] sm:$0xff] }
 0x1c4   :  { %v1660_v9 = vpop.eup %1659  ;;  %v617_v10 = vmul.f32 1.442695, %v586_v23  ;;  %659 = vadd.xlane.f32.xlu1 %v1658_v44  ;;  %v758_v37 = vmul.f32 %v1658_v44, %v752_v26  ;;  %v475_v23 = vmul.f32 1.442695, %v2790_v61  ;;  %v2791_v44 = vsub.f32 %v2188_v14, %v2199_v20 }
 0x1c5   :  { %673 = vadd.xlane.f32.xlu0 %v1660_v9  ;;  %v765_v56 = vmul.f32 %v1660_v9, %v752_v26  ;;  %v2795_v14 = vsub.f32 %v2223_v32, %v2239_v42  ;;  %v2796_v20 = vsub.f32 %v2241_v46, %v2256_v53  ;;  %v469_v41 = vmul.f32 1.442695, %v2798_v31 }
 0x1c6   :  { %1673 = vpow2.f32 %v617_v10  ;;  %v461_v9 = vmul.f32 1.442695, %v2791_v44  ;;  %v2792_v10 = vsub.f32 %v2201_v21, %v2216_v29  ;;  %v2799_v46 = vsub.f32 %v2263_v0, %v2279_v50 }
 0x1c7   :  { %v1662_v4 = vpop.eup %1661  ;;  %1675 = vpow2.f32 %v459_v15  ;;  %v479_v18 = vmul.f32 1.442695, %v2795_v14  ;;  %v467_v21 = vmul.f32 1.442695, %v2796_v20  ;;  %v471_v1 = vmul.f32 1.442695, %v2800_v55 }
 0x1c8   :  { %v1664_v5 = vpop.eup %1663  ;;  %661 = vadd.xlane.f32.xlu1 %v1662_v4  ;;  %v759_v24 = vmul.f32 %v1662_v4, %v752_v26  ;;  %1677 = vpow2.f32 %v475_v23  ;;  %v463_v4 = vmul.f32 1.442695, %v2792_v10  ;;  %v483_v53 = vmul.f32 1.442695, %v2799_v46  ;;  %v623_v23 = vld [vmem:[#allocation3 + $0x20] sm:$0xff] }
 0x1c9   :  { %675 = vadd.xlane.f32.xlu0 %v1664_v5  ;;  %v766_v60 = vmul.f32 %v1664_v5, %v752_v26  ;;  %1679 = vpow2.f32 %v461_v9  ;;  %v2793_v5 = vsub.f32 %v2203_v22, %v2219_v30  ;;  %v2797_v22 = vsub.f32 %v2243_v47, %v2259_v54  ;;  %v620_v54 = vld [vmem:[#allocation3 + $0x8] sm:$0xff] }
 0x1ca   :  { %1681 = vpow2.f32 %v463_v4  ;;  %v2801_v0 = vsub.f32 %v2283_v3, %v2299_v28  ;;  %v630_v4 = vld [vmem:[#allocation3 + $0x58] sm:$0xff] }
 0x1cb   :  { %v1666_v33 = vpop.eup %1665  ;;  %v477_v8 = vmul.f32 1.442695, %v2793_v5  ;;  %v481_v30 = vmul.f32 1.442695, %v2797_v22 }
 0x1cc   :  { %v1668_v25 = vpop.eup %1667  ;;  %663 = vadd.xlane.f32.xlu1 %v1666_v33  ;;  %v760_v52 = vmul.f32 %v1666_v33, %v752_v26  ;;  %v619_v33 = vld [vmem:[#allocation3] sm:$0xff]  ;;  %v485_v50 = vmul.f32 1.442695, %v2801_v0  ;;  %v626_v0 = vld [vmem:[#allocation3 + $0x38] sm:$0xff] }
 0x1cd   :  { %677 = vadd.xlane.f32.xlu0 %v1668_v25  ;;  %v767_v34 = vmul.f32 %v1668_v25, %v752_v26  ;;  %1683 = vpow2.f32 %v477_v8 }
 0x1ce   :  { %1685 = vpow2.f32 %v465_v13  ;;  %v624_v13 = vld [vmem:[#allocation3 + $0x28] sm:$0xff] }
 0x1cf   :  { %v1670_v7 = vpop.eup %1669  ;;  %1687 = vpow2.f32 %v479_v18 }
 0x1d0   :  { %v1672_v19 = vpop.eup %1671  ;;  %665 = vadd.xlane.f32.xlu1 %v1670_v7  ;;  %v761_v59 = vmul.f32 %v1670_v7, %v752_v26  ;;  %1689 = vpow2.f32 %v467_v21  ;;  %v631_v21 = vld [vmem:[#allocation3 + $0x60] sm:$0xff] }
 0x1d1   :  { %679 = vadd.xlane.f32.xlu0 %v1672_v19  ;;  %v768_v39 = vmul.f32 %v1672_v19, %v752_v26  ;;  %1691 = vpow2.f32 %v481_v30 }
 0x1d2   :  { %1693 = vpow2.f32 %v469_v41 }
 0x1d3   :  { %v1674_v11 = vpop.eup %1673  ;;  %1695 = vpow2.f32 %v483_v53 }
 0x1d4   :  { %770 = vadd.xlane.f32.xlu1 %v754_v6  ;;  %v769_v57 = vmul.f32 %v1674_v11, %v752_v26  ;;  %v2388_v29 = vpop.eup %1675  ;;  %1697 = vpow2.f32 %v471_v1 }
 0x1d5   :  { %681 = vadd.xlane.f32.xlu0 %v1674_v11  ;;  %v635_v32 = vmul.f32 %v2388_v29, %v619_v33  ;;  %v2397_v42 = vpop.eup %1677  ;;  %1699 = vpow2.f32 %v485_v50 }
 0x1d6   :  { %v2402_v26 = vpop.eup %1679  ;;  %v643_v7 = vmul.f32 %v2397_v42, %v627_v62  ;;  %v632_v62 = vld [vmem:[#allocation3 + $0x68] sm:$0xff] }
 0x1d7   :  { %v2409_v19 = vpop.eup %1681  ;;  %v636_v6 = vmul.f32 %v2402_v26, %v620_v54 }
 0x1d8   :  { %772 = vadd.xlane.f32.xlu1 %v755_v43  ;;  %v621_v43 = vld [vmem:[#allocation3 + $0x10] sm:$0xff] }
 0x1d9   :  { %786 = vadd.xlane.f32.xlu0 %v762_v40  ;;  %v637_v3 = vmul.f32 %v2409_v19, %v621_v43  ;;  %v633_v43 = vld [vmem:[#allocation3 + $0x70] sm:$0xff] }
 0x1da   :  { %v2415_v40 = vpop.eup %1683 }
 0x1db   :  { %v2422_v28 = vpop.eup %1685 }
 0x1dc   :  { %774 = vadd.xlane.f32.xlu1 %v756_v45 }
 0x1dd   :  { %788 = vadd.xlane.f32.xlu0 %v763_v48 }
 0x1e0   :  { %776 = vadd.xlane.f32.xlu1 %v757_v36  ;;  %v2802_v36 = vsub.f32 %v2301_v35, %v2316_v16 }
 0x1e1   :  { %790 = vadd.xlane.f32.xlu0 %v764_v49 }
 0x1e2   :  { %v473_v49 = vmul.f32 1.442695, %v2802_v36 }
 0x1e4   :  { %778 = vadd.xlane.f32.xlu1 %v758_v37  ;;  %v2803_v37 = vsub.f32 %v2303_v38, %v2319_v17  ;;  %1701 = vpow2.f32 %v473_v49  ;;  %v2804_v38 = vsub.f32 %v2321_v51, %v2334_v63  ;;  %v716_v49 = vld [vmem:[#allocation4] sm:$0xff] }
 0x1e5   :  { %792 = vadd.xlane.f32.xlu0 %v765_v56 }
 0x1e6   :  { %v487_v56 = vmul.f32 1.442695, %v2803_v37  ;;  %v489_v17 = vmul.f32 1.442695, %v2804_v38 }
 0x1e8   :  { %780 = vadd.xlane.f32.xlu1 %v759_v24  ;;  %v644_v24 = vmul.f32 %v2415_v40, %v628_v27  ;;  %1703 = vpow2.f32 %v487_v56 }
 0x1e9   :  { %794 = vadd.xlane.f32.xlu0 %v766_v60  ;;  %1705 = vpow2.f32 %v489_v17 }
 0x1ec   :  { %782 = vadd.xlane.f32.xlu1 %v760_v52  ;;  %v622_v52 = vld [vmem:[#allocation3 + $0x18] sm:$0xff] }
 0x1ed   :  { %796 = vadd.xlane.f32.xlu0 %v767_v34  ;;  %v2429_v34 = vpop.eup %1687 }
 0x1ee   :  { %v2433_v58 = vpop.eup %1689 }
 0x1ef   :  { %v2440_v44 = vpop.eup %1691  ;;  %v639_v8 = vmul.f32 %v2433_v58, %v623_v23 }
 0x1f0   :  { %784 = vadd.xlane.f32.xlu1 %v761_v59  ;;  %v629_v59 = vld [vmem:[#allocation3 + $0x50] sm:$0xff]  ;;  %v2444_v12 = vpop.eup %1693  ;;  %v646_v51 = vmul.f32 %v2440_v44, %v630_v4 }
 0x1f1   :  { %798 = vadd.xlane.f32.xlu0 %v768_v39  ;;  %v645_v15 = vmul.f32 %v2429_v34, %v629_v59  ;;  %v2448_v14 = vpop.eup %1695  ;;  %v640_v30 = vmul.f32 %v2444_v12, %v624_v13 }
 0x1f2   :  { %v2452_v33 = vpop.eup %1697  ;;  %v647_v31 = vmul.f32 %v2448_v14, %v631_v21 }
 0x1f3   :  { %v2456_v46 = vpop.eup %1699 }
 0x1f4   :  { %v2460_v55 = vpop.eup %1701  ;;  %v648_v1 = vmul.f32 %v2456_v46, %v632_v62 }
 0x1f5   :  { %800 = vadd.xlane.f32.xlu0 %v769_v57  ;;  %v638_v57 = vmul.f32 %v2422_v28, %v622_v52  ;;  %v2464_v50 = vpop.eup %1703  ;;  %v642_v27 = vmul.f32 %v2460_v55, %v626_v0 }
 0x23d   :  { %v652_v25 = vpop.xlane.xlu0 %651 }
 0x23e   :  { %v683_v47 = vadd.f32 %v652_v25, %v635_v32  ;;  %v625_v32 = vld [vmem:[#allocation3 + $0x30] sm:$0xff] }
 0x23f   :  { %v641_v54 = vmul.f32 %v2452_v33, %v625_v32 }
 0x240   :  { %700 = vst.msk [vmem:[#allocation3] sm:$0xff] %vm46_vm5, %v683_v47 }
 0x241   :  { %v668_v11 = vpop.xlane.xlu1 %667 }
 0x242   :  { %v654_v45 = vpop.xlane.xlu0 %653  ;;  %v691_v2 = vadd.f32 %v668_v11, %v643_v7 }
 0x243   :  { %v684_v48 = vadd.f32 %v654_v45, %v636_v6 }
 0x244   :  { %708 = vst.msk [vmem:[#allocation3 + $0x40] sm:$0xff] %vm46_vm5, %v691_v2 }
 0x245   :  { %701 = vst.msk [vmem:[#allocation3 + $0x8] sm:$0xff] %vm46_vm5, %v684_v48  ;;  %v656_v60 = vpop.xlane.xlu1 %655  ;;  %v649_v48 = vmul.f32 %v2464_v50, %v633_v43 }
 0x246   :  { %v670_v35 = vpop.xlane.xlu0 %669  ;;  %v685_v16 = vadd.f32 %v656_v60, %v637_v3  ;;  %v2470_v3 = vpop.eup %1705 }
 0x247   :  { %v692_v39 = vadd.f32 %v670_v35, %v644_v24  ;;  %v869_v2 = vld [vmem:[#allocation3] sm:$0xff]  ;;  %v634_v24 = vld [vmem:[#allocation3 + $0x78] sm:$0xff]  ;;  %v732_v35 = vmul.f32 %v2388_v29, %v716_v49 }
 0x248   :  { %702 = vst.msk [vmem:[#allocation3 + $0x10] sm:$0xff] %vm46_vm5, %v685_v16  ;;  %1707 = vrcp.f32 %v869_v2  ;;  %v650_v59 = vmul.f32 %v2470_v3, %v634_v24 }
 0x249   :  { %709 = vst.msk [vmem:[#allocation3 + $0x48] sm:$0xff] %vm46_vm5, %v692_v39  ;;  %v658_v61 = vpop.xlane.xlu1 %657 }
 0x24a   :  { %v672_v9 = vpop.xlane.xlu0 %671  ;;  %v686_v10 = vadd.f32 %v658_v61, %v638_v57  ;;  %v717_v57 = vld [vmem:[#allocation4 + $0x8] sm:$0xff] }
 0x24b   :  { %v693_v5 = vadd.f32 %v672_v9, %v645_v15  ;;  %v877_v16 = vld [vmem:[#allocation3 + $0x40] sm:$0xff]  ;;  %v733_v9 = vmul.f32 %v2402_v26, %v717_v57 }
 0x24c   :  { %703 = vst.msk [vmem:[#allocation3 + $0x18] sm:$0xff] %vm46_vm5, %v686_v10  ;;  %v870_v52 = vld [vmem:[#allocation3 + $0x8] sm:$0xff]  ;;  %v724_v15 = vld [vmem:[#allocation4 + $0x40] sm:$0xff] }
 0x24d   :  { %710 = vst.msk [vmem:[#allocation3 + $0x50] sm:$0xff] %vm46_vm5, %v693_v5  ;;  %v660_v63 = vpop.xlane.xlu1 %659  ;;  %1709 = vrcp.f32 %v870_v52  ;;  %v740_v29 = vmul.f32 %v2397_v42, %v724_v15  ;;  %v718_v5 = vld [vmem:[#allocation4 + $0x10] sm:$0xff]  ;;  %v719_v42 = vld [vmem:[#allocation4 + $0x18] sm:$0xff] }
 0x24e   :  { %v674_v18 = vpop.xlane.xlu0 %673  ;;  %v687_v20 = vadd.f32 %v660_v63, %v639_v8  ;;  %1711 = vrcp.f32 %v877_v16  ;;  %v725_v63 = vld [vmem:[#allocation4 + $0x48] sm:$0xff]  ;;  %v728_v16 = vld [vmem:[#allocation4 + $0x60] sm:$0xff] }
 0x24f   :  { %v694_v22 = vadd.f32 %v674_v18, %v646_v51  ;;  %v871_v23 = vld [vmem:[#allocation3 + $0x10] sm:$0xff]  ;;  %v741_v26 = vmul.f32 %v2415_v40, %v725_v63 }
 0x250   :  { %704 = vst.msk [vmem:[#allocation3 + $0x20] sm:$0xff] %vm46_vm5, %v687_v20  ;;  %v878_v10 = vld [vmem:[#allocation3 + $0x48] sm:$0xff]  ;;  %1713 = vrcp.f32 %v871_v23  ;;  %v734_v20 = vmul.f32 %v2409_v19, %v718_v5  ;;  %v735_v19 = vmul.f32 %v2422_v28, %v719_v42  ;;  %v744_v23 = vmul.f32 %v2448_v14, %v728_v16  ;;  %v1139_v16 = vld [vmem:[%s2755_s6] sm:$0xff] }
 0x251   :  { %711 = vst.msk [vmem:[#allocation3 + $0x58] sm:$0xff] %vm46_vm5, %v694_v22  ;;  %v662_v41 = vpop.xlane.xlu1 %661  ;;  %1715 = vrcp.f32 %v878_v10 }
 0x252   :  { %v676_v53 = vpop.xlane.xlu0 %675  ;;  %v688_v25 = vadd.f32 %v662_v41, %v640_v30  ;;  %v726_v41 = vld [vmem:[#allocation4 + $0x50] sm:$0xff] }
 0x253   :  { %v695_v47 = vadd.f32 %v676_v53, %v647_v31  ;;  %v872_v18 = vld [vmem:[#allocation3 + $0x18] sm:$0xff]  ;;  %v742_v40 = vmul.f32 %v2429_v34, %v726_v41 }
 0x254   :  { %705 = vst.msk [vmem:[#allocation3 + $0x28] sm:$0xff] %vm46_vm5, %v688_v25  ;;  %v879_v21 = vld [vmem:[#allocation3 + $0x50] sm:$0xff]  ;;  %1717 = vrcp.f32 %v872_v18 }
 0x255   :  { %712 = vst.msk [vmem:[#allocation3 + $0x60] sm:$0xff] %vm46_vm5, %v695_v47  ;;  %v664_v7 = vpop.xlane.xlu1 %663  ;;  %v1708_v32 = vpop.eup %1707  ;;  %1719 = vrcp.f32 %v879_v21 }
 0x256   :  { %v678_v6 = vpop.xlane.xlu0 %677  ;;  %v689_v11 = vadd.f32 %v664_v7, %v641_v54  ;;  %v720_v7 = vld [vmem:[#allocation4 + $0x20] sm:$0xff] }
 0x257   :  { %v696_v45 = vadd.f32 %v678_v6, %v648_v1  ;;  %v873_v62 = vld [vmem:[#allocation3 + $0x20] sm:$0xff]  ;;  %v736_v28 = vmul.f32 %v2433_v58, %v720_v7 }
 0x258   :  { %706 = vst.msk [vmem:[#allocation3 + $0x30] sm:$0xff] %vm46_vm5, %v689_v11  ;;  %v880_v54 = vld [vmem:[#allocation3 + $0x58] sm:$0xff]  ;;  %1721 = vrcp.f32 %v873_v62 }
 0x259   :  { %713 = vst.msk [vmem:[#allocation3 + $0x68] sm:$0xff] %vm46_vm5, %v696_v45  ;;  %v666_v36 = vpop.xlane.xlu1 %665  ;;  %v727_v11 = vld [vmem:[#allocation4 + $0x58] sm:$0xff]  ;;  %1723 = vrcp.f32 %v880_v54 }
 0x25a   :  { %v680_v37 = vpop.xlane.xlu0 %679  ;;  %v690_v56 = vadd.f32 %v666_v36, %v642_v27  ;;  %v1710_v43 = vpop.eup %1709 }
 0x25b   :  { %v697_v60 = vadd.f32 %v680_v37, %v649_v48  ;;  %v874_v27 = vld [vmem:[#allocation3 + $0x28] sm:$0xff]  ;;  %v1712_v48 = vpop.eup %1711  ;;  %v743_v37 = vmul.f32 %v2440_v44, %v727_v11 }
 0x25c   :  { %707 = vst.msk [vmem:[#allocation3 + $0x38] sm:$0xff] %vm46_vm5, %v690_v56  ;;  %v881_v34 = vld [vmem:[#allocation3 + $0x60] sm:$0xff]  ;;  %1725 = vrcp.f32 %v874_v27 }
 0x25d   :  { %714 = vst.msk [vmem:[#allocation3 + $0x70] sm:$0xff] %vm46_vm5, %v697_v60  ;;  %v771_v39 = vpop.xlane.xlu1 %770  ;;  %v721_v60 = vld [vmem:[#allocation4 + $0x28] sm:$0xff]  ;;  %1727 = vrcp.f32 %v881_v34 }
 0x25e   :  { %v682_v38 = vpop.xlane.xlu0 %681  ;;  %v802_v17 = vadd.f32 %v771_v39, %v732_v35  ;;  %v1140_v34 = vld [vmem:[%s2755_s6 + $0x8] sm:$0xff] }
 0x25f   :  { %v698_v61 = vadd.f32 %v682_v38, %v650_v59  ;;  %v1714_v59 = vpop.eup %1713  ;;  %v875_v58 = vld [vmem:[#allocation3 + $0x30] sm:$0xff]  ;;  %1602 = vmatprep.subr.mxu0 %v1140_v34  ;;  %1630 = vmatprep.subr.mxu1 %v1140_v34 }
 0x260   :  { %818 = vst.msk [vmem:[#allocation4] sm:$0xff] %vm46_vm5, %v802_v17  ;;  %v1716_v38 = vpop.eup %1715  ;;  %v737_v17 = vmul.f32 %v2444_v12, %v721_v60  ;;  %1729 = vrcp.f32 %v875_v58  ;;  %1603 = vmatpush3.msra.mxu0 %v1140_v34  ;;  %1632 = vmatpush3.msra.mxu1 %v1140_v34 }
 0x261   :  { %715 = vst.msk [vmem:[#allocation3 + $0x78] sm:$0xff] %vm46_vm5, %v698_v61  ;;  %v773_v4 = vpop.xlane.xlu1 %772  ;;  %v882_v61 = vld [vmem:[#allocation3 + $0x68] sm:$0xff]  ;;  %1604 = vmatprep.subr.mxu0 %v1139_v16  ;;  %1631 = vmatprep.subr.mxu1 %v1139_v16 }
 0x262   :  { %v787_v8 = vpop.xlane.xlu0 %786  ;;  %v803_v51 = vadd.f32 %v773_v4, %v733_v9  ;;  %1731 = vrcp.f32 %v882_v61  ;;  %1605 = vmatpush3.msra.mxu0 %v1139_v16  ;;  %1633 = vmatpush3.msra.mxu1 %v1139_v16 }
 0x263   :  { %v810_v13 = vadd.f32 %v787_v8, %v740_v29  ;;  %v722_v29 = vld [vmem:[#allocation4 + $0x30] sm:$0xff]  ;;  %v729_v8 = vld [vmem:[#allocation4 + $0x68] sm:$0xff]  ;;  %v876_v12 = vld [vmem:[#allocation3 + $0x38] sm:$0xff] }
 0x264   :  { %819 = vst.msk [vmem:[#allocation4 + $0x8] sm:$0xff] %vm46_vm5, %v803_v51  ;;  %v1718_v51 = vpop.eup %1717  ;;  %1733 = vrcp.f32 %v876_v12  ;;  %v1131_v12 = vld [vmem:[%s2750_s1 + $0x40] sm:$0xff] }
 0x265   :  { %826 = vst.msk [vmem:[#allocation4 + $0x40] sm:$0xff] %vm46_vm5, %v810_v13  ;;  %v775_v22 = vpop.xlane.xlu1 %774  ;;  %v1720_v18 = vpop.eup %1719 }
 0x266   :  { %v789_v30 = vpop.xlane.xlu0 %788  ;;  %v804_v31 = vadd.f32 %v775_v22, %v734_v20  ;;  %v738_v20 = vmul.f32 %v2452_v33, %v722_v29  ;;  %v745_v22 = vmul.f32 %v2456_v46, %v729_v8  ;;  %v1126_v29 = vld [vmem:[%s2750_s1 + $0x18] sm:$0xff]  ;;  %v1127_v8 = vld [vmem:[%s2750_s1 + $0x20] sm:$0xff] }
 0x267   :  { %v811_v53 = vadd.f32 %v789_v30, %v741_v26  ;;  %v853_v25 = vld [vmem:[#allocation4] sm:$0xff]  ;;  %v883_v26 = vld [vmem:[#allocation3 + $0x70] sm:$0xff] }
 0x268   :  { %820 = vst.msk [vmem:[#allocation4 + $0x10] sm:$0xff] %vm46_vm5, %v804_v31  ;;  %v901_v47 = vmul.f32 %v1708_v32, %v853_v25  ;;  %v723_v31 = vld [vmem:[#allocation4 + $0x38] sm:$0xff]  ;;  %v1722_v25 = vpop.eup %1721  ;;  %1735 = vrcp.f32 %v883_v26 }
 0x269   :  { %827 = vst.msk [vmem:[#allocation4 + $0x48] sm:$0xff] %vm46_vm5, %v811_v53  ;;  %v777_v1 = vpop.xlane.xlu1 %776  ;;  %v730_v53 = vld [vmem:[#allocation4 + $0x70] sm:$0xff]  ;;  %v1724_v33 = vpop.eup %1723  ;;  %v1138_v26 = vld [vmem:[%s2750_s1 + $0x78] sm:$0xff] }
 0x26a   :  { %v791_v0 = vpop.xlane.xlu0 %790  ;;  %v805_v6 = vadd.f32 %v777_v1, %v735_v19  ;;  %920 = vperm.xlu1 %1640, %v901_v47   ;;  %v739_v47 = vmul.f32 %v2460_v55, %v723_v31  ;;  %v746_v1 = vmul.f32 %v2464_v50, %v730_v53 }
 0x26b   :  { %v812_v45 = vadd.f32 %v791_v0, %v742_v40  ;;  %v854_v2 = vld [vmem:[#allocation4 + $0x8] sm:$0xff]  ;;  %v884_v40 = vld [vmem:[#allocation3 + $0x78] sm:$0xff] }
 0x26c   :  { %821 = vst.msk [vmem:[#allocation4 + $0x18] sm:$0xff] %vm46_vm5, %v805_v6  ;;  %v861_v36 = vld [vmem:[#allocation4 + $0x40] sm:$0xff]  ;;  %v902_v49 = vmul.f32 %v1710_v43, %v854_v2  ;;  %v731_v43 = vld [vmem:[#allocation4 + $0x78] sm:$0xff]  ;;  %1737 = vrcp.f32 %v884_v40 }
 0x26d   :  { %828 = vst.msk [vmem:[#allocation4 + $0x50] sm:$0xff] %vm46_vm5, %v812_v45  ;;  %v779_v56 = vpop.xlane.xlu1 %778  ;;  %v909_v24 = vmul.f32 %v1712_v48, %v861_v36  ;;  %v1726_v45 = vpop.eup %1725  ;;  %v747_v50 = vmul.f32 %v2470_v3, %v731_v43 }
 0x26e   :  { %v793_v52 = vpop.xlane.xlu0 %792  ;;  %v806_v35 = vadd.f32 %v779_v56, %v736_v28  ;;  %925 = vperm.xlu1 %1640, %v902_v49   ;;  %v1728_v48 = vpop.eup %1727 }
 0x26f   :  { %v813_v39 = vadd.f32 %v793_v52, %v743_v37  ;;  %960 = vperm.xlu0 %1639, %v909_v24   ;;  %v855_v57 = vld [vmem:[#allocation4 + $0x10] sm:$0xff]  ;;  %v1730_v37 = vpop.eup %1729 }
 0x270   :  { %822 = vst.msk [vmem:[#allocation4 + $0x20] sm:$0xff] %vm46_vm5, %v806_v35  ;;  %v903_v44 = vmul.f32 %v1714_v59, %v855_v57  ;;  %v862_v15 = vld [vmem:[#allocation4 + $0x48] sm:$0xff]  ;;  %v1732_v60 = vpop.eup %1731 }
 0x271   :  { %829 = vst.msk [vmem:[#allocation4 + $0x58] sm:$0xff] %vm46_vm5, %v813_v39  ;;  %v781_v9 = vpop.xlane.xlu1 %780  ;;  %v910_v10 = vmul.f32 %v1716_v38, %v862_v15  ;;  %v1734_v59 = vpop.eup %1733 }
 0x272   :  { %v795_v4 = vpop.xlane.xlu0 %794  ;;  %v807_v5 = vadd.f32 %v781_v9, %v737_v17  ;;  %v1124_v9 = vld [vmem:[%s2750_s1 + $0x8] sm:$0xff] }
 0x273   :  { %v814_v63 = vadd.f32 %v795_v4, %v744_v23  ;;  %930 = vperm.xlu0 %1639, %v903_v44   ;;  %965 = vperm.xlu1 %1640, %v910_v10   ;;  %v856_v13 = vld [vmem:[#allocation4 + $0x18] sm:$0xff]  ;;  %v1123_v23 = vld [vmem:[%s2750_s1] sm:$0xff]  ;;  %v1789_v10 = vmov 1   ;;  %v1125_v4 = vld [vmem:[%s2750_s1 + $0x10] sm:$0xff] }
 0x274   :  { %823 = vst.msk [vmem:[#allocation4 + $0x28] sm:$0xff] %vm46_vm5, %v807_v5  ;;  %v904_v14 = vmul.f32 %v1718_v51, %v856_v13  ;;  %v863_v21 = vld [vmem:[#allocation4 + $0x50] sm:$0xff]  ;;  %v1128_v5 = vld [vmem:[%s2750_s1 + $0x28] sm:$0xff]  ;;  %v1130_v51 = vld [vmem:[%s2750_s1 + $0x38] sm:$0xff] }
 0x275   :  { %830 = vst.msk [vmem:[#allocation4 + $0x60] sm:$0xff] %vm46_vm5, %v814_v63  ;;  %v783_v42 = vpop.xlane.xlu1 %782  ;;  %v911_v30 = vmul.f32 %v1720_v18, %v863_v21  ;;  %v1736_v57 = vpop.eup %1735  ;;  %v1129_v63 = vld [vmem:[%s2750_s1 + $0x30] sm:$0xff]  ;;  %v1132_v13 = vld [vmem:[%s2750_s1 + $0x48] sm:$0xff]  ;;  %v1134_v18 = vld [vmem:[%s2750_s1 + $0x58] sm:$0xff] }
 0x276   :  { %v797_v41 = vpop.xlane.xlu0 %796  ;;  %v808_v32 = vadd.f32 %v783_v42, %v738_v20  ;;  %v1133_v20 = vld [vmem:[%s2750_s1 + $0x50] sm:$0xff]  ;;  %v1135_v21 = vld [vmem:[%s2750_s1 + $0x60] sm:$0xff] }
 0x277   :  { %v815_v62 = vadd.f32 %v797_v41, %v745_v22  ;;  %935 = vperm.xlu0 %1639, %v904_v14   ;;  %970 = vperm.xlu1 %1640, %v911_v30   ;;  %v857_v19 = vld [vmem:[#allocation4 + $0x20] sm:$0xff]  ;;  %v1136_v14 = vld [vmem:[%s2750_s1 + $0x68] sm:$0xff]  ;;  %v1137_v22 = vld [vmem:[%s2750_s1 + $0x70] sm:$0xff] }
 0x278   :  { %824 = vst.msk [vmem:[#allocation4 + $0x30] sm:$0xff] %vm46_vm5, %v808_v32  ;;  %v905_v54 = vmul.f32 %v1722_v25, %v857_v19  ;;  %v864_v46 = vld [vmem:[#allocation4 + $0x58] sm:$0xff]  ;;  %v2565_v42 = vld [vmem:[%s2753_s4] ss:$0 sm:$0xff] }
 0x279   :  { %831 = vst.msk [vmem:[#allocation4 + $0x68] sm:$0xff] %vm46_vm5, %v815_v62  ;;  %v785_v7 = vpop.xlane.xlu1 %784  ;;  %v912_v0 = vmul.f32 %v1724_v33, %v864_v46  ;;  %v1738_v44 = vpop.eup %1737  ;;  %v2570_v30 = vld [vmem:[%s2754_s5] ss:$0 sm:$0xff] }
 0x27a   :  { %v799_v6 = vpop.xlane.xlu0 %798  ;;  %v809_v11 = vadd.f32 %v785_v7, %v739_v47 }
 0x27b   :  { %v816_v2 = vadd.f32 %v799_v6, %v746_v1  ;;  %940 = vperm.xlu0 %1639, %v905_v54   ;;  %975 = vperm.xlu1 %1640, %v912_v0   ;;  %v858_v27 = vld [vmem:[#allocation4 + $0x28] sm:$0xff] }
 0x27c   :  { %825 = vst.msk [vmem:[#allocation4 + $0x38] sm:$0xff] %vm46_vm5, %v809_v11  ;;  %v906_v55 = vmul.f32 %v1726_v45, %v858_v27  ;;  %v865_v28 = vld [vmem:[#allocation4 + $0x60] sm:$0xff] }
 0x27d   :  { %832 = vst.msk [vmem:[#allocation4 + $0x70] sm:$0xff] %vm46_vm5, %v816_v2  ;;  %v913_v36 = vmul.f32 %v1728_v48, %v865_v28 }
 0x27e   :  { %v801_v49 = vpop.xlane.xlu0 %800 }
 0x27f   :  { %v817_v56 = vadd.f32 %v801_v49, %v747_v50  ;;  %945 = vperm.xlu0 %1639, %v906_v55   ;;  %980 = vperm.xlu1 %1640, %v913_v36   ;;  %v859_v24 = vld [vmem:[#allocation4 + $0x30] sm:$0xff] }
 0x280   :  { %v907_v52 = vmul.f32 %v1730_v37, %v859_v24  ;;  %v866_v35 = vld [vmem:[#allocation4 + $0x68] sm:$0xff] }
 0x281   :  { %833 = vst.msk [vmem:[#allocation4 + $0x78] sm:$0xff] %vm46_vm5, %v817_v56  ;;  %v914_v3 = vmul.f32 %v1732_v60, %v866_v35 }
 0x283   :  { %950 = vperm.xlu0 %1639, %v907_v52   ;;  %985 = vperm.xlu1 %1640, %v914_v3   ;;  %v860_v39 = vld [vmem:[#allocation4 + $0x38] sm:$0xff] }
 0x284   :  { %v908_v58 = vmul.f32 %v1734_v59, %v860_v39  ;;  %v867_v38 = vld [vmem:[#allocation4 + $0x70] sm:$0xff] }
 0x285   :  { %v915_v17 = vmul.f32 %v1736_v57, %v867_v38 }
 0x287   :  { %955 = vperm.xlu0 %1639, %v908_v58   ;;  %990 = vperm.xlu1 %1640, %v915_v17  }
 0x288   :  { %v868_v15 = vld [vmem:[#allocation4 + $0x78] sm:$0xff] }
 0x289   :  { %v916_v61 = vmul.f32 %v1738_v44, %v868_v15 }
 0x28b   :  { %995 = vperm.xlu1 %1640, %v916_v61   ;;  %1641 = vset.pattern.permute.xlu0 %v1789_v10 }
 0x28c   :  { %1337 = vperm.xlu0 %1641, %v1123_v23  }
 0x28f   :  { %1642 = vset.pattern.permute.xlu1 %v1789_v10 }
 0x290   :  { %1342 = vperm.xlu1 %1642, %v1124_v9   ;;  %1352 = vperm.xlu0 %1641, %v1126_v29  }
 0x294   :  { %1347 = vperm.xlu1 %1642, %v1125_v4   ;;  %1362 = vperm.xlu0 %1641, %v1128_v5  }
 0x298   :  { %1357 = vperm.xlu1 %1642, %v1127_v8   ;;  %1372 = vperm.xlu0 %1641, %v1130_v51  }
 0x29c   :  { %1367 = vperm.xlu1 %1642, %v1129_v63   ;;  %1382 = vperm.xlu0 %1641, %v1132_v13  }
 0x2a0   :  { %1377 = vperm.xlu1 %1642, %v1131_v12   ;;  %1392 = vperm.xlu0 %1641, %v1134_v18  }
 0x2a4   :  { %1387 = vperm.xlu1 %1642, %v1133_v20   ;;  %1402 = vperm.xlu0 %1641, %v1136_v14  }
 0x2a8   :  { %1397 = vperm.xlu1 %1642, %v1135_v21   ;;  %1412 = vperm.xlu0 %1641, %v1138_v26  }
 0x2ac   :  { %1407 = vperm.xlu1 %1642, %v1137_v22  }
 0x2e5   :  { %v921_v31 = vpop.permute.xlu1 %920 }
 0x2e6   :  { %v1004_v41 = vmul.f32 %v2565_v42, %v921_v31 }
 0x2e8   :  { %v1027_v32 = vadd.f32 %v2570_v30, %v1004_v41 }
 0x2e9   :  { %v926_v53 = vpop.permute.xlu1 %925 }
 0x2ea   :  { %v1059_v25 = vmul.f32 1.442695, %v1027_v32  ;;  %v961_v62 = vpop.permute.xlu0 %960  ;;  %v1005_v19 = vmul.f32 %v2565_v42, %v926_v53  ;;  %vm1043_vm5 = vcmp.gt.f32.partialorder %v1027_v32, 0.0 }
 0x2eb   :  { %v1012_v33 = vmul.f32 %v2565_v42, %v961_v62 }
 0x2ec   :  { %1739 = vpow2.f32 %v1059_v25  ;;  %v1028_v47 = vadd.f32 %v2570_v30, %v1005_v19 }
 0x2ed   :  { %v2578_v54 = vadd.f32 %v2570_v30, %v1012_v33 }
 0x2ee   :  { %v1061_v46 = vmul.f32 1.442695, %v1028_v47  ;;  %v931_v40 = vpop.permute.xlu0 %930  ;;  %v966_v1 = vpop.permute.xlu1 %965  ;;  %vm1044_vm2 = vcmp.gt.f32.partialorder %v1028_v47, 0.0 }
 0x2ef   :  { %v1075_v7 = vmul.f32 1.442695, %v2578_v54  ;;  %v1006_v0 = vmul.f32 %v2565_v42, %v931_v40  ;;  %v1013_v6 = vmul.f32 %v2565_v42, %v966_v1  ;;  %vm1051_vm3 = vcmp.gt.f32.partialorder %v2578_v54, 0.0 }
 0x2f0   :  { %1741 = vpow2.f32 %v1061_v46 }
 0x2f1   :  { %1743 = vpow2.f32 %v1075_v7  ;;  %v2584_v11 = vadd.f32 %v2570_v30, %v1006_v0  ;;  %v2587_v43 = vadd.f32 %v2570_v30, %v1013_v6 }
 0x2f2   :  { %v936_v45 = vpop.permute.xlu0 %935  ;;  %v971_v2 = vpop.permute.xlu1 %970 }
 0x2f3   :  { %v1063_v27 = vmul.f32 1.442695, %v2584_v11  ;;  %v1077_v48 = vmul.f32 1.442695, %v2587_v43  ;;  %v1007_v55 = vmul.f32 %v2565_v42, %v936_v45  ;;  %v1014_v28 = vmul.f32 %v2565_v42, %v971_v2 }
 0x2f4   :  { %vm1045_vm6 = vcmp.gt.f32.partialorder %v2584_v11, 0.0  ;;  %vm1052_vm7 = vcmp.gt.f32.partialorder %v2587_v43, 0.0 }
 0x2f5   :  { %1745 = vpow2.f32 %v1063_v27  ;;  %v2594_v50 = vadd.f32 %v2570_v30, %v1007_v55  ;;  %v2597_v36 = vadd.f32 %v2570_v30, %v1014_v28 }
 0x2f6   :  { %1747 = vpow2.f32 %v1077_v48  ;;  %v941_v49 = vpop.permute.xlu0 %940  ;;  %v976_v34 = vpop.permute.xlu1 %975 }
 0x2f7   :  { %v1065_v37 = vmul.f32 1.442695, %v2594_v50  ;;  %v1079_v56 = vmul.f32 1.442695, %v2597_v36  ;;  %v1008_v24 = vmul.f32 %v2565_v42, %v941_v49  ;;  %v1015_v60 = vmul.f32 %v2565_v42, %v976_v34 }
 0x2f8   :  { %vm1046_vm9 = vcmp.gt.f32.partialorder %v2594_v50, 0.0  ;;  %vm1053_vm10 = vcmp.gt.f32.partialorder %v2597_v36, 0.0 }
 0x2f9   :  { %v1740_v52 = vpop.eup %1739  ;;  %1749 = vpow2.f32 %v1065_v37  ;;  %v2604_v35 = vadd.f32 %v2570_v30, %v1008_v24  ;;  %v2607_v16 = vadd.f32 %v2570_v30, %v1015_v60 }
 0x2fa   :  { %1751 = vpow2.f32 %v1079_v56  ;;  %v946_v3 = vpop.permute.xlu0 %945  ;;  %v981_v59 = vpop.permute.xlu1 %980  ;;  %v1520_v39 = vadd.f32 -1.0, %v1740_v52 }
 0x2fb   :  { %v1067_v57 = vmul.f32 1.442695, %v2604_v35  ;;  %v1081_v58 = vmul.f32 1.442695, %v2607_v16  ;;  %v1009_v38 = vmul.f32 %v2565_v42, %v946_v3  ;;  %v1016_v17 = vmul.f32 %v2565_v42, %v981_v59 }
 0x2fc   :  { %v1107_v44 = vsel %vm1043_vm5, %v1027_v32, %v1520_v39  ;;  %vm1047_vm8 = vcmp.gt.f32.partialorder %v2604_v35, 0.0  ;;  %vm1054_vm11 = vcmp.gt.f32.partialorder %v2607_v16, 0.0 }
 0x2fd   :  { %v1742_v15 = vpop.eup %1741  ;;  %1753 = vpow2.f32 %v1067_v57  ;;  %v2614_v61 = vadd.f32 %v2570_v30, %v1009_v38  ;;  %v2617_v23 = vadd.f32 %v2570_v30, %v1016_v17  ;;  %1606 = vmatprep.mubr.msk.f32.mxu0 %vm1141_vm4, %v1107_v44 }
 0x2fe   :  { %v1744_v9 = vpop.eup %1743  ;;  %1755 = vpow2.f32 %v1081_v58  ;;  %v951_v10 = vpop.permute.xlu0 %950  ;;  %v1521_v4 = vadd.f32 -1.0, %v1742_v15 }
 0x2ff   :  { %v986_v29 = vpop.permute.xlu1 %985  ;;  %v1069_v5 = vmul.f32 1.442695, %v2614_v61  ;;  %v1083_v8 = vmul.f32 1.442695, %v2617_v23  ;;  %v1010_v51 = vmul.f32 %v2565_v42, %v951_v10  ;;  %v1528_v13 = vadd.f32 -1.0, %v1744_v9 }
 0x300   :  { %v1017_v63 = vmul.f32 %v2565_v42, %v986_v29  ;;  %v1108_v12 = vsel %vm1044_vm2, %v1028_v47, %v1521_v4  ;;  %vm1048_vm12 = vcmp.gt.f32.partialorder %v2614_v61, 0.0  ;;  %vm1055_vm13 = vcmp.gt.f32.partialorder %v2617_v23, 0.0 }
 0x301   :  { %1757 = vpow2.f32 %v1069_v5  ;;  %v2625_v18 = vadd.f32 %v2570_v30, %v1010_v51  ;;  %1607 = vmatmul.mubr.msk.f32.vlgmr.msra.gmra.mxu0 %vm1141_vm4, %v1108_v12  ;;  %v1115_v21 = vsel %vm1051_vm3, %v2578_v54, %v1528_v13  ;;  %vm1495_vm2 = vcmask 257024  }
 0x302   :  { %v2628_v20 = vadd.f32 %v2570_v30, %v1017_v63  ;;  %v1746_v14 = vpop.eup %1745  ;;  %1759 = vpow2.f32 %v1083_v8  ;;  %v956_v26 = vpop.permute.xlu0 %955  ;;  %1618 = vmatprep.mubr.msk.f32.mxu1 %vm1141_vm4, %v1115_v21 }
 0x303   :  { %v991_v22 = vpop.permute.xlu1 %990  ;;  %v1748_v31 = vpop.eup %1747  ;;  %v1071_v41 = vmul.f32 1.442695, %v2625_v18  ;;  %v1011_v53 = vmul.f32 %v2565_v42, %v956_v26  ;;  %v1522_v62 = vadd.f32 -1.0, %v1746_v14  ;;  %vm1049_vm14 = vcmp.gt.f32.partialorder %v2625_v18, 0.0 }
 0x304   :  { %v1085_v32 = vmul.f32 1.442695, %v2628_v20  ;;  %v1018_v25 = vmul.f32 %v2565_v42, %v991_v22  ;;  %v1529_v19 = vadd.f32 -1.0, %v1748_v31  ;;  %vm1056_vm15 = vcmp.gt.f32.partialorder %v2628_v20, 0.0 }
 0x305   :  { %1761 = vpow2.f32 %v1071_v41  ;;  %v2640_v33 = vadd.f32 %v2570_v30, %v1011_v53  ;;  %v1109_v46 = vsel %vm1045_vm6, %v2584_v11, %v1522_v62 }
 0x306   :  { %v2643_v47 = vadd.f32 %v2570_v30, %v1018_v25  ;;  %v1750_v54 = vpop.eup %1749  ;;  %1763 = vpow2.f32 %v1085_v32  ;;  %v1116_v40 = vsel %vm1052_vm7, %v2587_v43, %v1529_v19  ;;  %1609 = vmatprep.mubr.msk.f32.mxu0 %vm1141_vm4, %v1109_v46 }
 0x307   :  { %v996_v1 = vpop.permute.xlu1 %995  ;;  %v1752_v7 = vpop.eup %1751  ;;  %v1073_v0 = vmul.f32 1.442695, %v2640_v33  ;;  %1619 = vmatmul.mubr.msk.f32.vlgmr.msra.gmra.mxu1 %vm1141_vm4, %v1116_v40  ;;  %v1523_v2 = vadd.f32 -1.0, %v1750_v54  ;;  %vm1050_vm0 = vcmp.gt.f32.partialorder %v2640_v33, 0.0 }
 0x308   :  { %v1087_v6 = vmul.f32 1.442695, %v2643_v47  ;;  %v1019_v45 = vmul.f32 %v2565_v42, %v996_v1  ;;  %v1530_v27 = vadd.f32 -1.0, %v1752_v7  ;;  %vm1057_vm1 = vcmp.gt.f32.partialorder %v2643_v47, 0.0  ;;  %v1338_v29 = vpop.permute.xlu0 %1337 }
 0x309   :  { %1765 = vpow2.f32 %v1073_v0  ;;  %v1110_v43 = vsel %vm1046_vm9, %v2594_v50, %v1523_v2 }
 0x30a   :  { %v1042_v11 = vadd.f32 %v2570_v30, %v1019_v45  ;;  %v1754_v48 = vpop.eup %1753  ;;  %1767 = vpow2.f32 %v1087_v6  ;;  %1610 = vmatmul.mubr.msk.f32.gmra.mxu0 %vm1141_vm4, %v1110_v43  ;;  %v1117_v55 = vsel %vm1053_vm10, %v2597_v36, %v1530_v27 }
 0x30b   :  { %v1756_v28 = vpop.eup %1755  ;;  %1621 = vmatprep.mubr.msk.f32.mxu1 %vm1141_vm4, %v1117_v55  ;;  %v1524_v42 = vadd.f32 -1.0, %v1754_v48  ;;  %v1343_v4 = vpop.permute.xlu1 %1342 }
 0x30c   :  { %v1089_v49 = vmul.f32 1.442695, %v1042_v11  ;;  %v1531_v34 = vadd.f32 -1.0, %v1756_v28  ;;  %vm1058_vm5 = vcmp.gt.f32.partialorder %v1042_v11, 0.0  ;;  %v1353_v5 = vpop.permute.xlu0 %1352 }
 0x30d   :  { %v1111_v30 = vsel %vm1047_vm8, %v2604_v35, %v1524_v42 }
 0x30e   :  { %1769 = vpow2.f32 %v1089_v49  ;;  %v1758_v50 = vpop.eup %1757  ;;  %1612 = vmatprep.mubr.msk.f32.mxu0 %vm1141_vm4, %v1111_v30  ;;  %v1118_v37 = vsel %vm1054_vm11, %v2607_v16, %v1531_v34 }
 0x30f   :  { %v1760_v56 = vpop.eup %1759  ;;  %1622 = vmatmul.mubr.msk.f32.gmra.mxu1 %vm1141_vm4, %v1118_v37  ;;  %v1525_v36 = vadd.f32 -1.0, %v1758_v50  ;;  %v1348_v8 = vpop.permute.xlu1 %1347 }
 0x310   :  { %v1532_v24 = vadd.f32 -1.0, %v1760_v56  ;;  %v1363_v51 = vpop.permute.xlu0 %1362 }
 0x311   :  { %v1112_v60 = vsel %vm1048_vm12, %v2614_v61, %v1525_v36 }
 0x312   :  { %v1762_v52 = vpop.eup %1761  ;;  %1613 = vmatmul.mubr.msk.f32.gmra.mxu0 %vm1141_vm4, %v1112_v60  ;;  %v1119_v35 = vsel %vm1055_vm13, %v2617_v23, %v1532_v24 }
 0x313   :  { %v1764_v3 = vpop.eup %1763  ;;  %1624 = vmatprep.mubr.msk.f32.mxu1 %vm1141_vm4, %v1119_v35  ;;  %v1526_v16 = vadd.f32 -1.0, %v1762_v52  ;;  %v1358_v63 = vpop.permute.xlu1 %1357 }
 0x314   :  { %v1533_v59 = vadd.f32 -1.0, %v1764_v3  ;;  %v1373_v13 = vpop.permute.xlu0 %1372 }
 0x315   :  { %v1113_v39 = vsel %vm1049_vm14, %v2625_v18, %v1526_v16 }
 0x316   :  { %v1766_v57 = vpop.eup %1765  ;;  %1615 = vmatprep.mubr.msk.f32.mxu0 %vm1141_vm4, %v1113_v39  ;;  %v1120_v58 = vsel %vm1056_vm15, %v2628_v20, %v1533_v59 }
 0x317   :  { %v1768_v38 = vpop.eup %1767  ;;  %1625 = vmatmul.mubr.msk.f32.gmra.mxu1 %vm1141_vm4, %v1120_v58  ;;  %v1527_v17 = vadd.f32 -1.0, %v1766_v57  ;;  %v1368_v20 = vpop.permute.xlu1 %1367 }
 0x318   :  { %v1534_v44 = vadd.f32 -1.0, %v1768_v38  ;;  %v1383_v31 = vpop.permute.xlu0 %1382 }
 0x319   :  { %v1114_v15 = vsel %vm1050_vm0, %v2640_v33, %v1527_v17 }
 0x31a   :  { %1616 = vmatmul.mubr.msk.f32.gmra.mxu0 %vm1141_vm4, %v1114_v15  ;;  %v1121_v23 = vsel %vm1057_vm1, %v2643_v47, %v1534_v44 }
 0x31b   :  { %v1770_v61 = vpop.eup %1769  ;;  %1627 = vmatprep.mubr.msk.f32.mxu1 %vm1141_vm4, %v1121_v23  ;;  %v1378_v53 = vpop.permute.xlu1 %1377 }
 0x31c   :  { %v1535_v9 = vadd.f32 -1.0, %v1770_v61  ;;  %v1393_v7 = vpop.permute.xlu0 %1392 }
 0x31e   :  { %v1122_v10 = vsel %vm1058_vm5, %v1042_v11, %v1535_v9 }
 0x31f   :  { %1628 = vmatmul.mubr.msk.f32.gmra.mxu1 %vm1141_vm4, %v1122_v10  ;;  %v1388_v2 = vpop.permute.xlu1 %1387 }
 0x320   :  { %v1403_v30 = vpop.permute.xlu0 %1402 }
 0x323   :  { %v1398_v36 = vpop.permute.xlu1 %1397 }
 0x324   :  { %v1413_v58 = vpop.permute.xlu0 %1412 }
 0x327   :  { %v1408_v15 = vpop.permute.xlu1 %1407 }
 0x3c1   :  { %v1608_v12 = vpop.f32.mrf.mxu0 }
 0x3c2   :  { %v1416_v18 = vmul.f32 %v1608_v12, %v1343_v4 }
 0x3c3   :  { %v1256_v14 = vpop.f32.mrf.mxu0 }
 0x3c4   :  { %v1569_v21 = vpack.c.bf16 %v1416_v18, %v1416_v18  ;;  %v1415_v26 = vmul.f32 %v1338_v29, %v1256_v14 }
 0x3c6   :  { %1497 = vst.msk [vmem:[%s2756_s7 + $0x4] sm:$0xf] %vm1495_vm2, %v1569_v21  ;;  %v1568_v22 = vpack.c.bf16 %v1415_v26, %v1415_v26 }
 0x3c7   :  { %v1620_v41 = vpop.f32.mrf.mxu1 }
 0x3c8   :  { %1496 = vst.msk [vmem:[%s2756_s7] sm:$0xf] %vm1495_vm2, %v1568_v22  ;;  %v1424_v32 = vmul.f32 %v1620_v41, %v1383_v31 }
 0x3c9   :  { %v1296_v25 = vpop.f32.mrf.mxu1 }
 0x3ca   :  { %v1577_v62 = vpack.c.bf16 %v1424_v32, %v1424_v32  ;;  %v1423_v19 = vmul.f32 %v1378_v53, %v1296_v25  ;;  %v1611_v33 = vpop.f32.mrf.mxu0 }
 0x3cb   :  { %v1418_v47 = vmul.f32 %v1611_v33, %v1353_v5 }
 0x3cc   :  { %1505 = vst.msk [vmem:[%s2756_s7 + $0x24] sm:$0xf] %vm1495_vm2, %v1577_v62  ;;  %v1576_v54 = vpack.c.bf16 %v1423_v19, %v1423_v19  ;;  %v1266_v46 = vpop.f32.mrf.mxu0 }
 0x3cd   :  { %v1571_v40 = vpack.c.bf16 %v1418_v47, %v1418_v47  ;;  %v1417_v1 = vmul.f32 %v1348_v8, %v1266_v46 }
 0x3ce   :  { %1504 = vst.msk [vmem:[%s2756_s7 + $0x20] sm:$0xf] %vm1495_vm2, %v1576_v54 }
 0x3cf   :  { %1499 = vst.msk [vmem:[%s2756_s7 + $0xc] sm:$0xf] %vm1495_vm2, %v1571_v40  ;;  %v1570_v0 = vpack.c.bf16 %v1417_v1, %v1417_v1  ;;  %v1623_v6 = vpop.f32.mrf.mxu1 }
 0x3d0   :  { %v1426_v45 = vmul.f32 %v1623_v6, %v1393_v7 }
 0x3d1   :  { %1498 = vst.msk [vmem:[%s2756_s7 + $0x8] sm:$0xf] %vm1495_vm2, %v1570_v0  ;;  %v1306_v27 = vpop.f32.mrf.mxu1 }
 0x3d2   :  { %v1579_v11 = vpack.c.bf16 %v1426_v45, %v1426_v45  ;;  %v1425_v43 = vmul.f32 %v1388_v2, %v1306_v27  ;;  %v1614_v48 = vpop.f32.mrf.mxu0 }
 0x3d3   :  { %v1420_v55 = vmul.f32 %v1614_v48, %v1363_v51 }
 0x3d4   :  { %1507 = vst.msk [vmem:[%s2756_s7 + $0x2c] sm:$0xf] %vm1495_vm2, %v1579_v11  ;;  %v1578_v28 = vpack.c.bf16 %v1425_v43, %v1425_v43  ;;  %v1276_v49 = vpop.f32.mrf.mxu0 }
 0x3d5   :  { %v1573_v42 = vpack.c.bf16 %v1420_v55, %v1420_v55  ;;  %v1419_v34 = vmul.f32 %v1358_v63, %v1276_v49 }
 0x3d6   :  { %1506 = vst.msk [vmem:[%s2756_s7 + $0x28] sm:$0xf] %vm1495_vm2, %v1578_v28 }
 0x3d7   :  { %1501 = vst.msk [vmem:[%s2756_s7 + $0x14] sm:$0xf] %vm1495_vm2, %v1573_v42  ;;  %v1572_v50 = vpack.c.bf16 %v1419_v34, %v1419_v34  ;;  %v1626_v37 = vpop.f32.mrf.mxu1 }
 0x3d8   :  { %v1428_v56 = vmul.f32 %v1626_v37, %v1403_v30 }
 0x3d9   :  { %1500 = vst.msk [vmem:[%s2756_s7 + $0x10] sm:$0xf] %vm1495_vm2, %v1572_v50  ;;  %v1316_v24 = vpop.f32.mrf.mxu1 }
 0x3da   :  { %v1581_v60 = vpack.c.bf16 %v1428_v56, %v1428_v56  ;;  %v1427_v52 = vmul.f32 %v1398_v36, %v1316_v24  ;;  %v1617_v35 = vpop.f32.mrf.mxu0 }
 0x3db   :  { %v1422_v3 = vmul.f32 %v1617_v35, %v1373_v13 }
 0x3dc   :  { %1509 = vst.msk [vmem:[%s2756_s7 + $0x34] sm:$0xf] %vm1495_vm2, %v1581_v60  ;;  %v1580_v16 = vpack.c.bf16 %v1427_v52, %v1427_v52  ;;  %v1286_v59 = vpop.f32.mrf.mxu0 }
 0x3dd   :  { %v1575_v39 = vpack.c.bf16 %v1422_v3, %v1422_v3  ;;  %v1421_v57 = vmul.f32 %v1368_v20, %v1286_v59 }
 0x3de   :  { %1508 = vst.msk [vmem:[%s2756_s7 + $0x30] sm:$0xf] %vm1495_vm2, %v1580_v16 }
 0x3df   :  { %v1629_v38 = vpop.f32.mrf.mxu1  ;;  %1503 = vst.msk [vmem:[%s2756_s7 + $0x1c] sm:$0xf] %vm1495_vm2, %v1575_v39  ;;  %v1574_v17 = vpack.c.bf16 %v1421_v57, %v1421_v57 }
 0x3e0   :  { %v1430_v44 = vmul.f32 %v1629_v38, %v1413_v58 }
 0x3e1   :  { %v1326_v61 = vpop.f32.mrf.mxu1  ;;  %1502 = vst.msk [vmem:[%s2756_s7 + $0x18] sm:$0xf] %vm1495_vm2, %v1574_v17 }
 0x3e2   :  { %v1583_v23 = vpack.c.bf16 %v1430_v44, %v1430_v44  ;;  %v1429_v9 = vmul.f32 %v1408_v15, %v1326_v61 }
 0x3e4   :  { %1511 = vst.msk [vmem:[%s2756_s7 + $0x3c] sm:$0xf] %vm1495_vm2, %v1583_v23  ;;  %v1582_v10 = vpack.c.bf16 %v1429_v9, %v1429_v9 }
 0x3e6   :  { %1510 = vst.msk [vmem:[%s2756_s7 + $0x38] sm:$0xf] %vm1495_vm2, %v1582_v10 }
 0x3e7   :  { %1516 = vsyncpa [#allocation6], 1 }

</bundles_post_ra>
